<compile_context>
chip_gen: v6e
topology: v6e:2x2x1
jax: 0.10.0
libtpu: 0.0.40
codegen_flags: <defaults>
</compile_context>

<pallas_src>
import functools
import math

import jax
import jax.numpy as jnp
from jax.experimental import pallas as pl
from jax.experimental.pallas import tpu as pltpu


def _round_up(a, b):
    return (a + b - 1) // b * b


def _self_attention_kernel(x_ref, wq_ref, wks_ref, rsum_ref, gs_ref,
                           bbc_ref, ratt_ref, out_ref, *, H, Dk):
    # x_ref:    (tm, C*D)
    # wq_ref:   (C*D, H*Dk)     packed W_q (all heads)
    # wks_ref:  (H*Dk, H*C*D)   block-diag Wk^T replicated over channels
    # rsum_ref: (H*C*D, H*C)    sums over d within each (h, c) group
    # gs_ref:   (H*C, H*C)      per-head group-sum (softmax denominators)
    # bbc_ref:  (H*C, H*C*D)    broadcasts score over d within each group
    # ratt_ref: (H*C*D, H*D)    sums over c within each (h, d) group
    # out_ref:  (tm, H*D + H*C) merged [att | score] slab
    f32 = jnp.float32
    dot = functools.partial(jnp.dot, preferred_element_type=f32,
                            precision=jax.lax.Precision.HIGHEST)

    x = x_ref[...].astype(f32)                                     # (tm, CD)

    # Fused Q for all heads: one (tm,CD)x(CD,H*Dk) MXU matmul.
    q = dot(x, wq_ref[...])                                        # (tm, H*Dk)

    # P replicated over channels: p_rep[m, h*C*D+c*D+d] = (Q_h @ Wk_h^T)[m, d].
    # TODO(synk): on v5e a compact (tm, H*D) P plus lane replication would halve
    # this matmul's 128-wide column passes; neutral on v6e/v7x, so not gated.
    p_rep = dot(q, wks_ref[...])                                   # (tm, H*C*D)

    # x replicated over heads via lane copies (no MXU matmul):
    # x_rep[m, h*C*D + j] = x[m, j]
    x_rep = jnp.concatenate([x] * H, axis=-1)                      # (tm, H*C*D)

    # QK[m, h*C+c] = sum_d x[m, c*D+d] * P_h[m, d]
    scale = 1.0 / math.sqrt(Dk)
    qk = dot(x_rep * p_rep, rsum_ref[...]) * scale                 # (tm, H*C)

    # Lane-dense softmax over the C channels of each head:
    # a single global row max is a valid shift for every per-head group (it
    # dominates each group max), exp on the full tile, per-head denominators
    # via one (HC, HC) group-sum matmul, exact divide to hold 1e-5 tolerance.
    gmax = jnp.max(qk, axis=-1, keepdims=True)
    e = jnp.exp(qk - gmax)                                         # (tm, H*C)
    sums = dot(e, gs_ref[...])                                     # (tm, H*C)
    score = e / sums                                               # (tm, H*C)

    # att[m, h*D+d] = sum_c score[m, h*C+c] * x[m, c*D+d]
    s_rep = dot(score, bbc_ref[...])                               # (tm, H*C*D)
    att = dot(s_rep * x_rep, ratt_ref[...])                        # (tm, H*D)

    # Single merged full-width store per grid step: [att | score].
    out_ref[...] = jnp.concatenate([att, score], axis=-1).astype(out_ref.dtype)


def self_attention_pallas(x, W_q, W_k, *, Tot, C, D, Dk, tm=2048):
    """x: (N, Tot, D). Returns (att (N, L, H*D), score (N, L, H*C))."""
    N = x.shape[0]
    L = Tot // C
    M = N * L
    H = W_q.shape[0]
    CD = C * D
    HC = H * C
    HD = H * D
    HCD = H * C * D
    OUT = HD + HC

    # Row tile: multiple of 8, large (amortizes ~0.35us/step overhead), capped
    # so the grid keeps >= 4 steps on large inputs (>= 2 per v7x TensorCore).
    tm_eff = min(tm, max(8, _round_up(max(M // 4, 1), 8)))
    tm_eff = _round_up(tm_eff, 8)
    M_pad = _round_up(M, tm_eff)

    f32 = jnp.float32
    # Flatten to lane-dense (M, C*D); zero-pad rows to a multiple of tm.
    # Zero-padded rows yield a uniform softmax (exp(0)/C) -- harmless, they are
    # sliced off below, so no mask is needed.
    x_flat = x.reshape(M, CD).astype(f32)
    if M_pad != M:
        x_flat = jnp.pad(x_flat, ((0, M_pad - M), (0, 0)))

    # Packed W_q: Wq_flat[c*D+d, h*Dk+t] = W_q[h, c, d, t]
    Wq_flat = jnp.transpose(W_q, (1, 2, 0, 3)).reshape(CD, H * Dk).astype(f32)

    # WkS[g*Dk+t, h*C*D + c*D + d] = (g == h) * W_k[h, d, t]  (replicated over c)
    WkT = jnp.swapaxes(W_k, 1, 2).astype(f32)                      # (H, Dk, D)
    eyeH = jnp.eye(H, dtype=f32)
    WkS = eyeH[:, None, :, None, None] * WkT[:, :, None, None, :]  # (H,Dk,H,1,D)
    WkS = jnp.broadcast_to(WkS, (H, Dk, H, C, D)).reshape(H * Dk, HCD)

    # Structural 0/1 selection matrices (prebuilt once in the wrapper).
    R_sum = jnp.kron(jnp.eye(HC, dtype=f32), jnp.ones((D, 1), f32))   # (HCD, HC)
    GS = jnp.kron(jnp.eye(H, dtype=f32), jnp.ones((C, C), f32))       # (HC, HC)
    B_bcast = R_sum.T                                                  # (HC, HCD)
    R_att = jnp.kron(jnp.eye(H, dtype=f32),
                     jnp.kron(jnp.ones((C, 1), f32), jnp.eye(D, dtype=f32)))  # (HCD, HD)

    kernel = functools.partial(_self_attention_kernel, H=H, Dk=Dk)

    out = pl.pallas_call(
        kernel,
        out_shape=jax.ShapeDtypeStruct((M_pad, OUT), f32),
        grid=(M_pad // tm_eff,),
        in_specs=[
            pl.BlockSpec((tm_eff, CD), lambda i: (i, 0)),
            pl.BlockSpec((CD, H * Dk), lambda i: (0, 0)),
            pl.BlockSpec((H * Dk, HCD), lambda i: (0, 0)),
            pl.BlockSpec((HCD, HC), lambda i: (0, 0)),
            pl.BlockSpec((HC, HC), lambda i: (0, 0)),
            pl.BlockSpec((HC, HCD), lambda i: (0, 0)),
            pl.BlockSpec((HCD, HD), lambda i: (0, 0)),
        ],
        out_specs=pl.BlockSpec((tm_eff, OUT), lambda i: (i, 0)),
        compiler_params=pltpu.CompilerParams(
            dimension_semantics=("parallel",),
            # 48 MiB fits the 64 MiB/TC budget on v7x with headroom; plenty
            # on v5e/v6e (128 MiB physical) for tm up to ~4096.
            vmem_limit_bytes=48 * 1024 * 1024,
        ),
    )(x_flat, Wq_flat, WkS, R_sum, GS, B_bcast, R_att)

    att = out[:M, :HD].reshape(N, L, HD)
    score = out[:M, HD:].reshape(N, L, HC)
    return att, score


def self_attention_reference(x, W_q, W_k, *, Tot, C, D, Dk):
    hp = jax.lax.Precision.HIGHEST
    N = x.shape[0]
    xr = x.reshape(N, Tot // C, C, D)
    atts, scores = [], []
    for h in range(W_q.shape[0]):
        Q = jnp.einsum('nlcd,cdt->nlt', xr, W_q[h], precision=hp)
        K = jnp.einsum('nlcd,dt->nlct', xr, W_k[h], precision=hp)
        QK = jnp.einsum('nlct,nlt->nlc', K, Q, precision=hp) / (Dk ** 0.5)
        s = jax.nn.softmax(QK, axis=2)
        atts.append(jnp.einsum('nlc,nlcd->nld', s, xr, precision=hp))
        scores.append(s)
    return jnp.concatenate(atts, -1), jnp.concatenate(scores, -1)


if __name__ == "__main__":
    # Small synthetic config consistent with the module's forward.
    N, Tot, C, D, Dk = 2, 32, 4, 8, 16
    H = 5  # module hard-codes 5 heads (W_q1..W_q5 / W_k1..W_k5)
    L = Tot // C

    key = jax.random.PRNGKey(0)
    kx, kq, kk = jax.random.split(key, 3)

    # Deterministic init mirroring reset_parameters():
    #   W_q*: uniform(-1/sqrt(C), 1/sqrt(C)),  W_k*: uniform(-1/sqrt(D), 1/sqrt(D))
    stdv_q = 1.0 / math.sqrt(C)
    stdv_k = 1.0 / math.sqrt(D)
    W_q = jax.random.uniform(kq, (H, C, D, Dk), jnp.float32, -stdv_q, stdv_q)
    W_k = jax.random.uniform(kk, (H, D, Dk), jnp.float32, -stdv_k, stdv_k)

    x = jax.random.normal(kx, (N, Tot, D), jnp.float32)

    att, score = self_attention_pallas(x, W_q, W_k, Tot=Tot, C=C, D=D, Dk=Dk)
    att = jax.block_until_ready(att)
    score = jax.block_until_ready(score)

    att_ref, score_ref = self_attention_reference(x, W_q, W_k, Tot=Tot, C=C, D=D, Dk=Dk)

    assert att.shape == (N, L, H * D) and score.shape == (N, L, H * C)
    assert jnp.allclose(att, att_ref, rtol=1e-5, atol=1e-5)
    assert jnp.allclose(score, score_ref, rtol=1e-5, atol=1e-5)

    print("KERNEL_OK")
</pallas_src>

<mosaic_0001>
module attributes {stable_mosaic.version = 11 : i64} {
  func.func @_self_attention_kernel(%arg0: i32, %arg1: memref<8x32xf32, #tpu.memory_space<vmem>>, %arg2: memref<32x80xf32, #tpu.memory_space<vmem>>, %arg3: memref<80x160xf32, #tpu.memory_space<vmem>>, %arg4: memref<160x20xf32, #tpu.memory_space<vmem>>, %arg5: memref<20x20xf32, #tpu.memory_space<vmem>>, %arg6: memref<20x160xf32, #tpu.memory_space<vmem>>, %arg7: memref<160x40xf32, #tpu.memory_space<vmem>>, %arg8: memref<8x60xf32, #tpu.memory_space<vmem>>) attributes {dimension_semantics = [#tpu.dimension_semantics<parallel>], iteration_bounds = array<i64: 2>, scalar_prefetch = 0 : i64, scratch_operands = 0 : i64, tpu.core_type = #tpu.core_type<tc>, window_params = [{transform_indices = @transform_0, window_bounds = array<i64: 8, 32>}, {pipeline_mode = #tpu.pipeline_mode<synchronous>, transform_indices = @transform_1, window_bounds = array<i64: 32, 80>}, {pipeline_mode = #tpu.pipeline_mode<synchronous>, transform_indices = @transform_2, window_bounds = array<i64: 80, 160>}, {pipeline_mode = #tpu.pipeline_mode<synchronous>, transform_indices = @transform_3, window_bounds = array<i64: 160, 20>}, {pipeline_mode = #tpu.pipeline_mode<synchronous>, transform_indices = @transform_4, window_bounds = array<i64: 20, 20>}, {pipeline_mode = #tpu.pipeline_mode<synchronous>, transform_indices = @transform_5, window_bounds = array<i64: 20, 160>}, {pipeline_mode = #tpu.pipeline_mode<synchronous>, transform_indices = @transform_6, window_bounds = array<i64: 160, 40>}, {transform_indices = @transform_7, window_bounds = array<i64: 8, 60>}]} {
    %c0 = arith.constant 0 : index
    %c0_0 = arith.constant 0 : index
    %0 = vector.load %arg1[%c0, %c0_0] : memref<8x32xf32, #tpu.memory_space<vmem>>, vector<8x32xf32>
    %c0_1 = arith.constant 0 : index
    %c0_2 = arith.constant 0 : index
    %1 = vector.load %arg2[%c0_1, %c0_2] : memref<32x80xf32, #tpu.memory_space<vmem>>, vector<32x80xf32>
    %cst = arith.constant dense<0.000000e+00> : vector<8x80xf32>
    %2 = tpu.matmul %0, %1, %cst {dimension_numbers = #tpu.dot_dimension_numbers<[1], [0], [0], [1], [0, 0, 1, 1], [], []>, precision = #tpu.contract_precision<fp32>} : vector<8x32xf32>, vector<32x80xf32>, vector<8x80xf32> -> vector<8x80xf32>
    %c0_3 = arith.constant 0 : index
    %c0_4 = arith.constant 0 : index
    %3 = vector.load %arg3[%c0_3, %c0_4] : memref<80x160xf32, #tpu.memory_space<vmem>>, vector<80x160xf32>
    %cst_5 = arith.constant dense<0.000000e+00> : vector<8x160xf32>
    %4 = tpu.matmul %2, %3, %cst_5 {dimension_numbers = #tpu.dot_dimension_numbers<[1], [0], [0], [1], [0, 0, 1, 1], [], []>, precision = #tpu.contract_precision<fp32>} : vector<8x80xf32>, vector<80x160xf32>, vector<8x160xf32> -> vector<8x160xf32>
    %5 = tpu.concatenate %0, %0, %0, %0, %0 in 1 : vector<8x32xf32>, vector<8x32xf32>, vector<8x32xf32>, vector<8x32xf32>, vector<8x32xf32> -> vector<8x160xf32>
    %6 = arith.mulf %5, %4 : vector<8x160xf32>
    %c0_6 = arith.constant 0 : index
    %c0_7 = arith.constant 0 : index
    %7 = vector.load %arg4[%c0_6, %c0_7] : memref<160x20xf32, #tpu.memory_space<vmem>>, vector<160x20xf32>
    %cst_8 = arith.constant dense<0.000000e+00> : vector<8x20xf32>
    %8 = tpu.matmul %6, %7, %cst_8 {dimension_numbers = #tpu.dot_dimension_numbers<[1], [0], [0], [1], [0, 0, 1, 1], [], []>, precision = #tpu.contract_precision<fp32>} : vector<8x160xf32>, vector<160x20xf32>, vector<8x20xf32> -> vector<8x20xf32>
    %cst_9 = arith.constant 2.500000e-01 : f32
    %9 = vector.broadcast %cst_9 : f32 to vector<8x20xf32>
    %10 = arith.mulf %8, %9 : vector<8x20xf32>
    %cst_10 = arith.constant dense<0xFF800000> : vector<8xf32>
    %11 = vector.multi_reduction <maximumf>, %10, %cst_10 [1] : vector<8x20xf32> to vector<8xf32>
    %12 = vector.shape_cast %11 : vector<8xf32> to vector<8x1xf32>
    %13 = vector.broadcast %12 : vector<8x1xf32> to vector<8x20xf32>
    %14 = arith.subf %10, %13 : vector<8x20xf32>
    %15 = math.exp %14 : vector<8x20xf32>
    %c0_11 = arith.constant 0 : index
    %c0_12 = arith.constant 0 : index
    %16 = vector.load %arg5[%c0_11, %c0_12] : memref<20x20xf32, #tpu.memory_space<vmem>>, vector<20x20xf32>
    %cst_13 = arith.constant dense<0.000000e+00> : vector<8x20xf32>
    %17 = tpu.matmul %15, %16, %cst_13 {dimension_numbers = #tpu.dot_dimension_numbers<[1], [0], [0], [1], [0, 0, 1, 1], [], []>, precision = #tpu.contract_precision<fp32>} : vector<8x20xf32>, vector<20x20xf32>, vector<8x20xf32> -> vector<8x20xf32>
    %18 = arith.divf %15, %17 : vector<8x20xf32>
    %c0_14 = arith.constant 0 : index
    %c0_15 = arith.constant 0 : index
    %19 = vector.load %arg6[%c0_14, %c0_15] : memref<20x160xf32, #tpu.memory_space<vmem>>, vector<20x160xf32>
    %cst_16 = arith.constant dense<0.000000e+00> : vector<8x160xf32>
    %20 = tpu.matmul %18, %19, %cst_16 {dimension_numbers = #tpu.dot_dimension_numbers<[1], [0], [0], [1], [0, 0, 1, 1], [], []>, precision = #tpu.contract_precision<fp32>} : vector<8x20xf32>, vector<20x160xf32>, vector<8x160xf32> -> vector<8x160xf32>
    %21 = arith.mulf %20, %5 : vector<8x160xf32>
    %c0_17 = arith.constant 0 : index
    %c0_18 = arith.constant 0 : index
    %22 = vector.load %arg7[%c0_17, %c0_18] : memref<160x40xf32, #tpu.memory_space<vmem>>, vector<160x40xf32>
    %cst_19 = arith.constant dense<0.000000e+00> : vector<8x40xf32>
    %23 = tpu.matmul %21, %22, %cst_19 {dimension_numbers = #tpu.dot_dimension_numbers<[1], [0], [0], [1], [0, 0, 1, 1], [], []>, precision = #tpu.contract_precision<fp32>} : vector<8x160xf32>, vector<160x40xf32>, vector<8x40xf32> -> vector<8x40xf32>
    %24 = tpu.concatenate %23, %18 in 1 : vector<8x40xf32>, vector<8x20xf32> -> vector<8x60xf32>
    %c0_20 = arith.constant 0 : index
    %c0_21 = arith.constant 0 : index
    %25 = vector.load %arg8[%c0_20, %c0_21] : memref<8x60xf32, #tpu.memory_space<vmem>>, vector<8x60xf32>
    tpu.vector_store %arg8[%c0_20, %c0_21], %24 {strides = array<i32>} : memref<8x60xf32, #tpu.memory_space<vmem>>, vector<8x60xf32>,
    return
  }
  func.func @transform_0(%arg0: i32) -> (i32, i32) {
    %c0_i32 = arith.constant 0 : i32
    %c0_i32_0 = arith.constant 0 : i32
    return %arg0, %c0_i32 : i32, i32
  }
  func.func @transform_1(%arg0: i32) -> (i32, i32) {
    %c0_i32 = arith.constant 0 : i32
    %c0_i32_0 = arith.constant 0 : i32
    %c0_i32_1 = arith.constant 0 : i32
    return %c0_i32, %c0_i32_0 : i32, i32
  }
  func.func @transform_2(%arg0: i32) -> (i32, i32) {
    %c0_i32 = arith.constant 0 : i32
    %c0_i32_0 = arith.constant 0 : i32
    %c0_i32_1 = arith.constant 0 : i32
    return %c0_i32, %c0_i32_0 : i32, i32
  }
  func.func @transform_3(%arg0: i32) -> (i32, i32) {
    %c0_i32 = arith.constant 0 : i32
    %c0_i32_0 = arith.constant 0 : i32
    %c0_i32_1 = arith.constant 0 : i32
    return %c0_i32, %c0_i32_0 : i32, i32
  }
  func.func @transform_4(%arg0: i32) -> (i32, i32) {
    %c0_i32 = arith.constant 0 : i32
    %c0_i32_0 = arith.constant 0 : i32
    %c0_i32_1 = arith.constant 0 : i32
    return %c0_i32, %c0_i32_0 : i32, i32
  }
  func.func @transform_5(%arg0: i32) -> (i32, i32) {
    %c0_i32 = arith.constant 0 : i32
    %c0_i32_0 = arith.constant 0 : i32
    %c0_i32_1 = arith.constant 0 : i32
    return %c0_i32, %c0_i32_0 : i32, i32
  }
  func.func @transform_6(%arg0: i32) -> (i32, i32) {
    %c0_i32 = arith.constant 0 : i32
    %c0_i32_0 = arith.constant 0 : i32
    %c0_i32_1 = arith.constant 0 : i32
    return %c0_i32, %c0_i32_0 : i32, i32
  }
  func.func @transform_7(%arg0: i32) -> (i32, i32) {
    %c0_i32 = arith.constant 0 : i32
    %c0_i32_0 = arith.constant 0 : i32
    return %arg0, %c0_i32 : i32, i32
  }
}

</mosaic_0001>

<bundles_post_ra>
// kernel: tpu_custom_call.1
= control target key start
LH: loop header
LB: loop body
LE: loop exit
PB: predicated region body
PF: predicated region fallthrough
CT: control target
= control target key end

     0   :  { %12 = vsyncpa [#allocation3], 0  ;;  %s6161_s0 = inlined_call_operand.vmem [shape: f32[16,32], index: 0, kind: input, shape index: {}]   ;;  %s6162_s1 = inlined_call_operand.vmem [shape: f32[32,80], index: 1, kind: input, shape index: {}]   ;;  %s6163_s2 = inlined_call_operand.vmem [shape: f32[80,160], index: 2, kind: input, shape index: {}]   ;;  %s6164_s3 = inlined_call_operand.vmem [shape: f32[160,20], index: 3, kind: input, shape index: {}]   ;;  %s6165_s4 = inlined_call_operand.vmem [shape: f32[20,20], index: 4, kind: input, shape index: {}]   ;;  %s6166_s5 = inlined_call_operand.vmem [shape: f32[20,160], index: 5, kind: input, shape index: {}]   ;;  %s6167_s6 = inlined_call_operand.vmem [shape: f32[160,40], index: 6, kind: input, shape index: {}]   ;;  %s6168_s7 = inlined_call_operand.hbm [shape: f32[16,60], index: 7, kind: output, shape index: {}]  }
   0x1   :  { %14 = vsyncpa [#allocation3 + $0x1], 0  ;;  %s4415_s24 = smov 0   ;;  %s4417_s25 = smov 0  }
   0x2   :  { %s4419_s26 = smov 0   ;;  %s4421_s27 = smov 0  }
   0x3 LB: > { %s4436_s28 = sadd.s32 4294967295, %s4366_s27   ;;  %s4071_s29 = sadd.s32 4294967294, %s4366_s27   ;;  %s4366_s27 = sphi %s4421_s27, %s6289_s27   ;;  %s4362_s26 = sphi %s4419_s26, %s6288_s26   ;;  %s4358_s25 = sphi %s4417_s25, %s6287_s25   ;;  %s4354_s24 = sphi %s4415_s24, %s6286_s24  }
   0x4   : > { %s4440_s30 = sadd.s32 1, %s4366_s27   ;;  %s179_s8 = sadd.s32 1, %s4362_s26 }
   0x5   : > { %s176_s9 = ssub.s32 %s4366_s27, %s4440_s30  ;;  %p189_p0 = scmp.ne.s32.totalorder %s4362_s26, %s4358_s25 }
   0x6   : > { %p177_p1 = scmp.eq.s32.totalorder %s176_s9, 0  ;;  %p190_p2 = scmp.eq.s32.totalorder %s4436_s28, 1 }
   0x7   : > { %p195_p3 = scmp.ne.s32.totalorder %s4358_s25, %s4354_s24  ;;  %p196_p4 = scmp.eq.s32.totalorder %s4071_s29, 1 }
   0x8   : > { %s4451_s10 = scalar_select %p177_p1, %s4362_s26, %s179_s8  }
   0x9   : > { %p4453_p5 = por %p190_p2, %p189_p0  ;;  %p4457_p6 = por %p196_p4, %p195_p3 }
   0xa   : > { %p4074_p7 = scmp.ge.s32.totalorder %s4366_s27, 1  ;;  %p239_p8 = scmp.lt.s32.totalorder %s4366_s27, 3 }
   0xc   : > { %p240_p9 = pnand %p4074_p7, %p239_p8 }
   0xd   : > { %p270_p10 = scmp.lt.s32.totalorder (!%p240_p9), %s4436_s28, 1  ;;  %s4370_s13 = smov (!%p240_p9), 32  }
   0xe   : > { %243 = sbr.rel (%p240_p9) target bundleno = 1720 (0x6b8), region = 48  ;;  %s4371_s14 = smov (!%p240_p9), 96  }
   0xf   : > { %s4372_s15 = smov (!%p240_p9), 64   ;;  %s4078_s9 = sshll.u32 (!%p240_p9), %s4436_s28, 7 }
  0x10   : > { %s6126_s17 = scalar_lea.hbm (!%p240_p9), %s6168_s7, %s4078_s9 }
  0x13   : > { %v278_v0 = vld [vmem:[%s6162_s1 + $0x18] sm:$0xff]  ;;  %v277_v1 = vld [vmem:[%s6162_s1 + $0x10] sm:$0xff]  ;;  %v276_v2 = vld [vmem:[%s6162_s1 + $0x8] sm:$0xff]  ;;  %v6205_v3 = vmov 0.0   ;;  %vm4369_vm0 = vmmov 0   ;;  %s271_s21 = scalar_select %p270_p10, %s4436_s28, 1 }
  0x14   : > { %4135 = vmatprep.subr.mxu0 %v6205_v3  ;;  %v4474_v4 = vand.u32 4294901760, %v278_v0  ;;  %4146 = vmatprep.subr.mxu1 %v6205_v3  ;;  %v4477_v5 = vand.u32 4294901760, %v277_v1  ;;  %v4479_v6 = vand.u32 4294901760, %v276_v2  ;;  %v275_v7 = vld [vmem:[%s6162_s1] sm:$0xff]  ;;  %vm279_vm1 = vcmask 261120   ;;  %v787_v32 = vld [vmem:[%s6163_s2 + $0x98] sm:$0xff] }
  0x15   : > { %v4484_v8 = vand.u32 4294901760, %v275_v7  ;;  %4143 = vmatprep.mubr.msk.f32.mxu0 %vm4369_vm0, %v6205_v3  ;;  %4154 = vmatprep.mubr.msk.f32.mxu1 %vm4369_vm0, %v6205_v3  ;;  %s4076_s22 = sshll.u32 %s271_s21, 3  ;;  %v4567_v33 = vand.u32 4294901760, %v787_v32  ;;  %v786_v34 = vld [vmem:[%s6163_s2 + $0x90] sm:$0xff]  ;;  %v785_v36 = vld [vmem:[%s6163_s2 + $0x88] sm:$0xff]  ;;  %v784_v39 = vld [vmem:[%s6163_s2 + $0x80] sm:$0xff] }
  0x16   : > { %4136 = vmatpush3.msra.mxu0 %v4474_v4  ;;  %v388_v9 = vsub.f32 %v278_v0, %v4474_v4  ;;  %v4494_v10 = vsub.f32 %v277_v1, %v4477_v5  ;;  %v4497_v11 = vsub.f32 %v276_v2, %v4479_v6  ;;  %s4509_s8 = scalar_lea.vmem %s6161_s0, %s4076_s22  ;;  %v4572_v35 = vand.u32 4294901760, %v786_v34  ;;  %v783_v42 = vld [vmem:[%s6163_s2 + $0x78] sm:$0xff]  ;;  %v782_v46 = vld [vmem:[%s6163_s2 + $0x70] sm:$0xff]  ;;  %v781_v50 = vld [vmem:[%s6163_s2 + $0x68] sm:$0xff]  ;;  %s4374_s28 = smov [#allocation2]  }
  0x17   : > { %4137 = vmatprep.subr.mxu0 %v6205_v3  ;;  %v4501_v12 = vsub.f32 %v275_v7, %v4484_v8  ;;  %v4514_v17 = vld [vmem:[%s4509_s8] sm:$0xff]  ;;  %v4578_v37 = vsub.f32 %v787_v32, %v4567_v33  ;;  %v4580_v38 = vand.u32 4294901760, %v785_v36  ;;  %v4589_v41 = vand.u32 4294901760, %v784_v39  ;;  %v779_v60 = vld [vmem:[%s6163_s2 + $0x58] sm:$0xff]  ;;  %v778_v1 = vld [vmem:[%s6163_s2 + $0x50] sm:$0xff]  ;;  %s4310_s20 = sshll.u32 %s4374_s28, 4  ;;  %s4311_s20 = int_to_ptr.vmem [resolvable:$false] %s4310_s20 }
  0x18   : > { %v389_v13 = vand.u32 4294901760, %v388_v9  ;;  %4138 = vmatpush3.msra.mxu0 %v4477_v5  ;;  %v396_v14 = vand.u32 4294901760, %v4494_v10  ;;  %v403_v15 = vand.u32 4294901760, %v4497_v11  ;;  %v281_v21 = vsel %vm279_vm1, %v4514_v17, 0  ;;  %v780_v55 = vld [vmem:[%s6163_s2 + $0x60] sm:$0xff]  ;;  %v777_v7 = vld [vmem:[%s6163_s2 + $0x48] sm:$0xff]  ;;  %1491 = vrot.lane.b32.xlu0 %v4514_v17, %s4370_s13 }
  0x19   : > { %4139 = vmatprep.subr.mxu0 %v6205_v3  ;;  %v410_v16 = vand.u32 4294901760, %v4501_v12  ;;  %v352_v22 = vand.u32 4294901760, %v281_v21  ;;  %v4587_v40 = vsub.f32 %v786_v34, %v4572_v35  ;;  %v902_v43 = vand.u32 4294901760, %v4578_v37  ;;  %v772_v34 = vld [vmem:[%s6163_s2 + $0x20] sm:$0xff]  ;;  %1497 = vrot.lane.b32.xlu1 %v4514_v17, %s4371_s14  ;;  %s4373_s13 = smov 40   ;;  %s4312_s21 = scalar_lea.vmem %s4311_s20, 256 }
  0x1a   : > { %v390_v18 = vsub.f32 %v388_v9, %v389_v13  ;;  %v397_v19 = vsub.f32 %v4494_v10, %v396_v14  ;;  %4140 = vmatpush3.msra.mxu0 %v4479_v6  ;;  %v404_v20 = vsub.f32 %v4497_v11, %v403_v15  ;;  %v4597_v44 = vsub.f32 %v785_v36, %v4580_v38 }
  0x1b   : > { %4141 = vmatprep.subr.mxu0 %v6205_v3  ;;  %v411_v25 = vsub.f32 %v4501_v12, %v410_v16  ;;  %v353_v26 = vsub.f32 %v281_v21, %v352_v22  ;;  %v4599_v45 = vand.u32 4294901760, %v783_v42  ;;  %v908_v47 = vand.u32 4294901760, %v4587_v40 }
  0x1c   : > { %v391_v23 = vand.u32 4294901760, %v390_v18  ;;  %v398_v24 = vand.u32 4294901760, %v397_v19  ;;  %4142 = vmatpush3.msra.mxu0 %v4484_v8  ;;  %v405_v27 = vand.u32 4294901760, %v404_v20  ;;  %v4607_v48 = vsub.f32 %v784_v39, %v4589_v41  ;;  %v775_v18 = vld [vmem:[%s6163_s2 + $0x38] sm:$0xff]  ;;  %1494 = vrot.lane.b32.xlu0 %v4514_v17, %s4372_s15 }
  0x1d   : > { %4157 = vmatprep.subr.mxu0 %v6205_v3  ;;  %v354_v28 = vand.u32 4294901760, %v353_v26  ;;  %v412_v29 = vand.u32 4294901760, %v411_v25  ;;  %v4609_v49 = vand.u32 4294901760, %v782_v46  ;;  %v903_v51 = vsub.f32 %v4578_v37, %v902_v43 }
  0x1e   : > { %4147 = vmatpush3.msra.mxu1 %v391_v23  ;;  %v914_v52 = vand.u32 4294901760, %v4597_v44  ;;  %v4620_v53 = vsub.f32 %v783_v42, %v4599_v45  ;;  %v4622_v54 = vand.u32 4294901760, %v781_v50  ;;  %v909_v56 = vsub.f32 %v4587_v40, %v908_v47  ;;  %v774_v23 = vld [vmem:[%s6163_s2 + $0x30] sm:$0xff] }
  0x1f   : > { %4148 = vmatprep.subr.mxu1 %v6205_v3  ;;  %v355_v30 = vsub.f32 %v353_v26, %v354_v28  ;;  %v920_v57 = vand.u32 4294901760, %v4607_v48  ;;  %v4633_v58 = vsub.f32 %v782_v46, %v4609_v49  ;;  %v4635_v59 = vand.u32 4294901760, %v780_v55 }
  0x20   : > { %4149 = vmatpush3.msra.mxu1 %v398_v24  ;;  %v904_v61 = vand.u32 4294901760, %v903_v51  ;;  %v915_v62 = vsub.f32 %v4597_v44, %v914_v52  ;;  %v6184_v63 = vand.u32 4294901760, %v4620_v53  ;;  %v4646_v0 = vsub.f32 %v781_v50, %v4622_v54 }
  0x21   : > { %4150 = vmatprep.subr.mxu1 %v6205_v3  ;;  %v356_v31 = vand.u32 4294901760, %v355_v30  ;;  %v910_v2 = vand.u32 4294901760, %v909_v56  ;;  %v4709_v32 = vand.u32 4294901760, %v775_v18  ;;  %v4719_v46 = vand.u32 4294901760, %v774_v23 }
  0x22   : > { %4151 = vmatpush3.msra.mxu1 %v405_v27  ;;  %vm788_vm2 = vcmask 654336   ;;  %vm1501_vm3 = vcmask 523264   ;;  %vm1503_vm4 = vcmask 785408   ;;  %vm2237_vm5 = vcmask 162816  }
  0x23   : > { %4152 = vmatprep.subr.mxu1 %v6205_v3  ;;  %4144 = vmatmul.mubr.f32.vlgmr.msra.gmra.mxu0 %v356_v31  ;;  %vm2250_vm6 = vcmask 1043456   ;;  %vm3994_vm7 = vcmask 326656   ;;  %vm3996_vm8 = vcmask 490496  }
  0x24   : > { %4153 = vmatpush3.msra.mxu1 %v412_v29  ;;  %4158 = vmatpush3.msra.mxu0 %v388_v9  ;;  %v927_v9 = vsub.f32 %v4620_v53, %v6184_v63 }
  0x25   : > { %4155 = vmatmul.mubr.f32.vlgmr.msra.gmra.mxu1 %v352_v22  ;;  %4168 = vmatprep.subr.mxu1 %v6205_v3 }
  0x26   : > { %4159 = vmatprep.subr.mxu0 %v6205_v3  ;;  %4169 = vmatpush3.msra.mxu1 %v4474_v4  ;;  %v928_v19 = vand.u32 4294901760, %v927_v9 }
  0x27   : > { %4160 = vmatpush3.msra.mxu0 %v4494_v10  ;;  %4170 = vmatprep.subr.mxu1 %v6205_v3  ;;  %v6182_v10 = vand.u32 4294901760, %v4646_v0 }
  0x28   : > { %4161 = vmatprep.subr.mxu0 %v6205_v3  ;;  %4171 = vmatpush3.msra.mxu1 %v4477_v5 }
  0x29   : > { %4162 = vmatpush3.msra.mxu0 %v4497_v11  ;;  %4172 = vmatprep.subr.mxu1 %v6205_v3  ;;  %v4667_v11 = vand.u32 4294901760, %v779_v60  ;;  %v939_v20 = vsub.f32 %v4646_v0, %v6182_v10 }
  0x2a   : > { %4163 = vmatprep.subr.mxu0 %v6205_v3  ;;  %4173 = vmatpush3.msra.mxu1 %v4479_v6 }
  0x2b   : > { %4164 = vmatpush3.msra.mxu0 %v4501_v12  ;;  %4165 = vmatprep.mubr.msk.f32.mxu0 %vm4369_vm0, %v6205_v3  ;;  %v776_v12 = vld [vmem:[%s6163_s2 + $0x40] sm:$0xff]  ;;  %v4685_v21 = vsub.f32 %v779_v60, %v4667_v11  ;;  %v940_v29 = vand.u32 4294901760, %v939_v20  ;;  %v769_v20 = vld [vmem:[%s6163_s2 + $0x8] sm:$0xff] }
  0x2c   : > { %4174 = vmatprep.subr.mxu1 %v6205_v3  ;;  %4166 = vmatmul.mubr.f32.vlgmr.msra.gmra.mxu0 %v353_v26  ;;  %v4699_v27 = vand.u32 4294901760, %v776_v12 }
  0x2d   : > { %4175 = vmatpush3.msra.mxu1 %v4484_v8  ;;  %4176 = vmatprep.mubr.msk.f32.mxu1 %vm4369_vm0, %v6205_v3  ;;  %v6180_v30 = vand.u32 4294901760, %v4685_v21 }
  0x2e   : > { %4179 = vmatprep.subr.mxu0 %v6205_v3  ;;  %4177 = vmatmul.mubr.f32.vlgmr.msra.gmra.mxu1 %v354_v28  ;;  %v773_v28 = vld [vmem:[%s6163_s2 + $0x28] sm:$0xff]  ;;  %v4717_v42 = vsub.f32 %v776_v12, %v4699_v27  ;;  %v770_v12 = vld [vmem:[%s6163_s2 + $0x10] sm:$0xff] }
  0x2f   : > { %4180 = vmatpush3.msra.mxu0 %v389_v13  ;;  %4190 = vmatprep.subr.mxu1 %v6205_v3  ;;  %v951_v50 = vsub.f32 %v4685_v21, %v6180_v30  ;;  %v4729_v56 = vand.u32 4294901760, %v773_v28 }
  0x30   : > { %4181 = vmatprep.subr.mxu0 %v6205_v3  ;;  %4191 = vmatpush3.msra.mxu1 %v4474_v4  ;;  %v921_v4 = vsub.f32 %v4607_v48, %v920_v57 }
  0x31   : > { %4182 = vmatpush3.msra.mxu0 %v396_v14  ;;  %4192 = vmatprep.subr.mxu1 %v6205_v3  ;;  %v4750_v9 = vsub.f32 %v773_v28, %v4729_v56 }
  0x32   : > { %4183 = vmatprep.subr.mxu0 %v6205_v3  ;;  %4193 = vmatpush3.msra.mxu1 %v4477_v5  ;;  %v6183_v5 = vand.u32 4294901760, %v4633_v58  ;;  %v922_v13 = vand.u32 4294901760, %v921_v4  ;;  %v952_v4 = vand.u32 4294901760, %v951_v50 }
  0x33   : > { %4184 = vmatpush3.msra.mxu0 %v403_v15  ;;  %4194 = vmatprep.subr.mxu1 %v6205_v3 }
  0x34   : > { %4185 = vmatprep.subr.mxu0 %v6205_v3  ;;  %4195 = vmatpush3.msra.mxu1 %v4479_v6  ;;  %v4657_v6 = vsub.f32 %v780_v55, %v4635_v59  ;;  %v933_v14 = vsub.f32 %v4633_v58, %v6183_v5  ;;  %v4727_v55 = vsub.f32 %v775_v18, %v4709_v32 }
  0x35   : > { %4186 = vmatpush3.msra.mxu0 %v410_v16  ;;  %4187 = vmatprep.mubr.msk.f32.mxu0 %vm4369_vm0, %v6205_v3  ;;  %v4676_v16 = vand.u32 4294901760, %v778_v1 }
  0x36   : > { %4196 = vmatprep.subr.mxu1 %v6205_v3  ;;  %4188 = vmatmul.mubr.f32.vlgmr.msra.gmra.mxu0 %v352_v22  ;;  %v6181_v15 = vand.u32 4294901760, %v4657_v6  ;;  %v934_v24 = vand.u32 4294901760, %v933_v14 }
  0x37   : > { %4197 = vmatpush3.msra.mxu1 %v4484_v8  ;;  %4198 = vmatprep.mubr.msk.f32.mxu1 %vm4369_vm0, %v6205_v3  ;;  %v916_v8 = vand.u32 4294901760, %v915_v62  ;;  %v4697_v26 = vsub.f32 %v778_v1, %v4676_v16  ;;  %v4737_v62 = vsub.f32 %v774_v23, %v4719_v46  ;;  %v4739_v1 = vand.u32 4294901760, %v772_v34 }
  0x38   : > { %4199 = vmatmul.mubr.f32.vlgmr.msra.gmra.mxu1 %v352_v22  ;;  %876 = vmatprep.mubr.f32.mxu0 %v6205_v3  ;;  %v4687_v22 = vand.u32 4294901760, %v777_v7  ;;  %v945_v25 = vsub.f32 %v4657_v6, %v6181_v15 }
  0x39   : > { %1052 = vmatprep.mubr.f32.mxu1 %v6205_v3  ;;  %805 = vmatprep.subr.mxu0 %v4567_v33  ;;  %v6179_v39 = vand.u32 4294901760, %v4697_v26  ;;  %v6172_v18 = vand.u32 4294901760, %v4737_v62 }
  0x3a   : > { %807 = vmatpush1.msra.mxu0 %v4572_v35  ;;  %905 = vmatprep.subr.mxu1 %v904_v61  ;;  %v4707_v31 = vsub.f32 %v777_v7, %v4687_v22  ;;  %v946_v36 = vand.u32 4294901760, %v945_v25  ;;  %v6170_v61 = vand.u32 4294901760, %v4717_v42  ;;  %v6171_v25 = vand.u32 4294901760, %v4750_v9 }
  0x3b   : > { %809 = vmatprep.subr.mxu0 %v4580_v38  ;;  %911 = vmatpush1.msra.mxu1 %v910_v2  ;;  %v957_v60 = vsub.f32 %v4697_v26, %v6179_v39  ;;  %v771_v2 = vld [vmem:[%s6163_s2 + $0x18] sm:$0xff] }
  0x3c   : > { %811 = vmatpush1.msra.mxu0 %v4589_v41  ;;  %917 = vmatprep.subr.mxu1 %v916_v8  ;;  %v6178_v51 = vand.u32 4294901760, %v4707_v31  ;;  %v6169_v8 = vand.u32 4294901760, %v4727_v55  ;;  %v969_v14 = vsub.f32 %v4717_v42, %v6170_v61  ;;  %v4771_v28 = vand.u32 4294901760, %v771_v2 }
  0x3d   : > { %813 = vmatprep.subr.mxu0 %v4599_v45  ;;  %923 = vmatpush1.msra.mxu1 %v922_v13  ;;  %v958_v13 = vand.u32 4294901760, %v957_v60  ;;  %v4780_v60 = vand.u32 4294901760, %v770_v12  ;;  %v4788_v61 = vand.u32 4294901760, %v769_v20 }
  0x3e   : > { %815 = vmatpush1.msra.mxu0 %v4609_v49  ;;  %929 = vmatprep.subr.mxu1 %v928_v19  ;;  %v963_v7 = vsub.f32 %v4707_v31, %v6178_v51  ;;  %v4761_v19 = vsub.f32 %v772_v34, %v4739_v1  ;;  %v970_v34 = vand.u32 4294901760, %v969_v14 }
  0x3f   : > { %817 = vmatprep.subr.mxu0 %v4622_v54  ;;  %935 = vmatpush1.msra.mxu1 %v934_v24  ;;  %v975_v24 = vsub.f32 %v4727_v55, %v6169_v8  ;;  %v4786_v8 = vsub.f32 %v771_v2, %v4771_v28 }
  0x40   : > { %819 = vmatpush1.msra.mxu0 %v4635_v59  ;;  %941 = vmatprep.subr.mxu1 %v940_v29  ;;  %v964_v23 = vand.u32 4294901760, %v963_v7  ;;  %v768_v29 = vld [vmem:[%s6163_s2] sm:$0xff]  ;;  %v6174_v50 = vand.u32 4294901760, %v4761_v19  ;;  %v987_v7 = vsub.f32 %v4750_v9, %v6171_v25 }
  0x41   : > { %821 = vmatprep.subr.mxu0 %v4667_v11  ;;  %947 = vmatpush1.msra.mxu1 %v946_v36  ;;  %v981_v36 = vsub.f32 %v4737_v62, %v6172_v18  ;;  %v6173_v25 = vand.u32 4294901760, %v4786_v8  ;;  %v4802_v18 = vsub.f32 %v769_v20, %v4788_v61 }
  0x42   : > { %823 = vmatpush1.msra.mxu0 %v4676_v16  ;;  %953 = vmatprep.subr.mxu1 %v952_v4  ;;  %v976_v4 = vand.u32 4294901760, %v975_v24  ;;  %v993_v14 = vsub.f32 %v4761_v19, %v6174_v50  ;;  %v4797_v24 = vand.u32 4294901760, %v768_v29  ;;  %v988_v2 = vand.u32 4294901760, %v987_v7 }
  0x43   : > { %825 = vmatprep.subr.mxu0 %v4687_v22  ;;  %959 = vmatpush1.msra.mxu1 %v958_v13  ;;  %v982_v13 = vand.u32 4294901760, %v981_v36  ;;  %v6176_v7 = vand.u32 4294901760, %v4802_v18 }
  0x44   : > { %827 = vmatpush1.msra.mxu0 %v4699_v27  ;;  %965 = vmatprep.subr.mxu1 %v964_v23  ;;  %v4795_v23 = vsub.f32 %v770_v12, %v4780_v60  ;;  %v4807_v12 = vsub.f32 %v768_v29, %v4797_v24 }
  0x45   : > { %829 = vmatprep.subr.mxu0 %v4709_v32  ;;  %971 = vmatpush1.msra.mxu1 %v970_v34  ;;  %v994_v34 = vand.u32 4294901760, %v993_v14  ;;  %v1011_v14 = vsub.f32 %v4802_v18, %v6176_v7 }
  0x46   : > { %831 = vmatpush1.msra.mxu0 %v4719_v46  ;;  %977 = vmatprep.subr.mxu1 %v976_v4  ;;  %v6177_v36 = vand.u32 4294901760, %v4795_v23  ;;  %v999_v4 = vsub.f32 %v4786_v8, %v6173_v25 }
  0x47   : > { %833 = vmatprep.subr.mxu0 %v4729_v56  ;;  %983 = vmatpush1.msra.mxu1 %v982_v13  ;;  %v6175_v13 = vand.u32 4294901760, %v4807_v12  ;;  %v1012_v50 = vand.u32 4294901760, %v1011_v14 }
  0x48   : > { %835 = vmatpush1.msra.mxu0 %v4739_v1  ;;  %989 = vmatprep.subr.mxu1 %v988_v2  ;;  %v1005_v20 = vsub.f32 %v4795_v23, %v6177_v36  ;;  %v1000_v29 = vand.u32 4294901760, %v999_v4 }
  0x49   : > { %837 = vmatprep.subr.mxu0 %v4771_v28  ;;  %995 = vmatpush1.msra.mxu1 %v994_v34  ;;  %v1017_v25 = vsub.f32 %v4807_v12, %v6175_v13 }
  0x4a   : > { %839 = vmatpush1.msra.mxu0 %v4780_v60  ;;  %v1006_v2 = vand.u32 4294901760, %v1005_v20  ;;  %1001 = vmatprep.subr.mxu1 %v1000_v29 }
  0x4b   : > { %841 = vmatprep.subr.mxu0 %v4788_v61  ;;  %v1018_v34 = vand.u32 4294901760, %v1017_v25 }
  0x4c   : > { %843 = vmatpush1.msra.mxu0 %v4797_v24  ;;  %1007 = vmatpush1.msra.mxu1 %v1006_v2 }
  0x4d   : > { %1074 = vmatprep.subr.mxu0 %v4578_v37  ;;  %1013 = vmatprep.subr.mxu1 %v1012_v50  ;;  %v6231_v37 = vand.u32 4294901760, %v4646_v0 }
  0x4e   : > { %1019 = vmatpush1.msra.mxu1 %v1018_v34 }
  0x4f   : > { %1186 = vmatprep.subr.mxu1 %v4567_v33 }
  0xe3   : > { %v358_v4 = vpop.f32.mrf.mxu0 }
  0xe5   : > { %v449_v20 = vpop.f32.mrf.mxu1  ;;  %v4145_v13 = vpop.f32.mrf.mxu0 }
  0xe6   : > { %v450_v50 = vadd.f32 %v449_v20, %v358_v4 }
  0xe7   : > { %v4156_v29 = vpop.f32.mrf.mxu1 }
  0xec   : > { %v529_v14 = vpop.f32.mrf.mxu0 }
  0xed   : > { %v530_v7 = vadd.f32 %v529_v14, %v450_v50 }
  0xee   : > { %v606_v2 = vpop.f32.mrf.mxu1  ;;  %v4167_v25 = vpop.f32.mrf.mxu0 }
  0xef   : > { %v607_v36 = vadd.f32 %v606_v2, %v530_v7  ;;  %v1514_v2 = vld [vmem:[%s6164_s3 + $0x38] sm:$0xff] }
  0xf0   : > { %v4178_v34 = vpop.f32.mrf.mxu1 }
  0xf6   : > { %v689_v51 = vpop.f32.mrf.mxu0 }
  0xf7   : > { %v690_v39 = vadd.f32 %v689_v51, %v607_v36  ;;  %v1515_v36 = vld [vmem:[%s6164_s3 + $0x40] sm:$0xff] }
  0xf8   : > { %v764_v30 = vpop.f32.mrf.mxu1  ;;  %v4189_v15 = vpop.f32.mrf.mxu0  ;;  %v5029_v29 = vand.u32 4294901760, %v1515_v36 }
  0xf9   : > { %v765_v10 = vadd.f32 %v764_v30, %v690_v39 }
  0xfa   : > { %v4200_v5 = vpop.f32.mrf.mxu1  ;;  %v5045_v34 = vsub.f32 %v1515_v36, %v5029_v29 }
  0xfb   : > { %v790_v63 = vsel %vm788_vm2, %v765_v10, 0  ;;  %v1520_v10 = vld [vmem:[%s6164_s3 + $0x68] sm:$0xff] }
  0xfc   : > { %v4829_v17 = vand.u32 4294901760, %v790_v63 }
  0xfe   : > { %v878_v13 = vsub.f32 %v790_v63, %v4829_v17  ;;  %1054 = vmatmul.mubr.f32.vlgmr.msra.gmra.mxu1 %v4829_v17  ;;  %v1521_v63 = vld [vmem:[%s6164_s3 + $0x70] sm:$0xff] }
  0xff   : > { %1188 = vmatpush1.msra.mxu1 %v4572_v35  ;;  %1257 = vmatprep.mubr.f32.mxu1 %v6205_v3 }
 0x100   : > { %v879_v4 = vand.u32 4294901760, %v878_v13  ;;  %1190 = vmatprep.subr.mxu1 %v4580_v38 }
 0x101   : > { %1192 = vmatpush1.msra.mxu1 %v4589_v41 }
 0x102   : > { %1194 = vmatprep.subr.mxu1 %v4599_v45  ;;  %v880_v15 = vsub.f32 %v878_v13, %v879_v4 }
 0x103   : > { %1196 = vmatpush1.msra.mxu1 %v4609_v49 }
 0x104   : > { %1198 = vmatprep.subr.mxu1 %v4622_v54  ;;  %v881_v5 = vand.u32 4294901760, %v880_v15 }
 0x105   : > { %1200 = vmatpush1.msra.mxu1 %v4635_v59 }
 0x106   : > { %1202 = vmatprep.subr.mxu1 %v4667_v11  ;;  %882 = vmatmul.mubr.f32.vlgmr.msra.gmra.mxu0 %v881_v5 }
 0x107   : > { %1077 = vmatpush1.msra.mxu0 %v4587_v40  ;;  %1204 = vmatpush1.msra.mxu1 %v4676_v16  ;;  %v6233_v40 = vand.u32 4294901760, %v4685_v21 }
 0x108   : > { %1080 = vmatprep.subr.mxu0 %v4597_v44  ;;  %1206 = vmatprep.subr.mxu1 %v4687_v22  ;;  %v6236_v44 = vand.u32 4294901760, %v4717_v42 }
 0x109   : > { %1083 = vmatpush1.msra.mxu0 %v4607_v48  ;;  %1208 = vmatpush1.msra.mxu1 %v4699_v27  ;;  %v6239_v48 = vand.u32 4294901760, %v4750_v9 }
 0x10a   : > { %1086 = vmatprep.subr.mxu0 %v4620_v53  ;;  %1210 = vmatprep.subr.mxu1 %v4709_v32 }
 0x10b   : > { %1089 = vmatpush1.msra.mxu0 %v4633_v58  ;;  %1212 = vmatpush1.msra.mxu1 %v4719_v46 }
 0x10c   : > { %1092 = vmatprep.subr.mxu0 %v4646_v0  ;;  %1214 = vmatprep.subr.mxu1 %v4729_v56 }
 0x10d   : > { %1095 = vmatpush1.msra.mxu0 %v4657_v6  ;;  %1216 = vmatpush1.msra.mxu1 %v4739_v1 }
 0x10e   : > { %1098 = vmatprep.subr.mxu0 %v4685_v21  ;;  %1218 = vmatprep.subr.mxu1 %v4771_v28  ;;  %v4961_v21 = vand.u32 4294901760, %v1520_v10 }
 0x10f   : > { %1101 = vmatpush1.msra.mxu0 %v4697_v26  ;;  %1220 = vmatpush1.msra.mxu1 %v4780_v60 }
 0x110   : > { %1104 = vmatprep.subr.mxu0 %v4707_v31  ;;  %1222 = vmatprep.subr.mxu1 %v4788_v61  ;;  %v4973_v30 = vsub.f32 %v1520_v10, %v4961_v21 }
 0x111   : > { %1107 = vmatpush1.msra.mxu0 %v4717_v42  ;;  %1224 = vmatpush1.msra.mxu1 %v4797_v24 }
 0x112   : > { %1110 = vmatprep.subr.mxu0 %v4727_v55  ;;  %1261 = vmatmul.mubr.f32.vlgmr.msra.gmra.mxu1 %v879_v4  ;;  %v1513_v4 = vld [vmem:[%s6164_s3 + $0x30] sm:$0xff] }
 0x113   : > { %1412 = vmatprep.subr.mxu1 %v4567_v33  ;;  %1113 = vmatpush1.msra.mxu0 %v4737_v62  ;;  %v6229_v33 = vand.u32 4294901760, %v4620_v53  ;;  %v6242_v53 = vand.u32 4294901760, %v4795_v23 }
 0x114   : > { %1414 = vmatpush1.msra.mxu1 %v4572_v35  ;;  %1116 = vmatprep.subr.mxu0 %v4750_v9  ;;  %v6230_v35 = vand.u32 4294901760, %v4633_v58  ;;  %v1522_v58 = vld [vmem:[%s6164_s3 + $0x78] sm:$0xff] }
 0x115   : > { %1416 = vmatprep.subr.mxu1 %v4580_v38  ;;  %1119 = vmatpush1.msra.mxu0 %v4761_v19  ;;  %v6232_v38 = vand.u32 4294901760, %v4657_v6  ;;  %v4950_v6 = vand.u32 4294901760, %v1521_v63 }
 0x116   : > { %1418 = vmatpush1.msra.mxu1 %v4589_v41  ;;  %1122 = vmatprep.subr.mxu0 %v4786_v8  ;;  %v6234_v41 = vand.u32 4294901760, %v4697_v26 }
 0x117   : > { %1420 = vmatprep.subr.mxu1 %v4599_v45  ;;  %1125 = vmatpush1.msra.mxu0 %v4795_v23  ;;  %v6237_v45 = vand.u32 4294901760, %v4727_v55 }
 0x118   : > { %1422 = vmatpush1.msra.mxu1 %v4609_v49  ;;  %1128 = vmatprep.subr.mxu0 %v4802_v18  ;;  %v6240_v49 = vand.u32 4294901760, %v4761_v19 }
 0x119   : > { %1424 = vmatprep.subr.mxu1 %v4622_v54  ;;  %1131 = vmatpush1.msra.mxu0 %v4807_v12  ;;  %v6243_v54 = vand.u32 4294901760, %v4802_v18  ;;  %v1516_v18 = vld [vmem:[%s6164_s3 + $0x48] sm:$0xff] }
 0x11a   : > { %1164 = vmatprep.mubr.f32.mxu0 %v6205_v3  ;;  %1426 = vmatpush1.msra.mxu1 %v4635_v59  ;;  %v4942_v59 = vand.u32 4294901760, %v1522_v58  ;;  %v5016_v23 = vand.u32 4294901760, %v1516_v18 }
 0x11b   : > { %1167 = vmatmul.mubr.f32.vlgmr.msra.gmra.mxu0 %v878_v13  ;;  %1282 = vmatprep.subr.mxu0 %v902_v43  ;;  %v6235_v43 = vand.u32 4294901760, %v4707_v31 }
 0x11c   : > { %1428 = vmatprep.subr.mxu1 %v4667_v11  ;;  %1286 = vmatpush1.msra.mxu0 %v908_v47  ;;  %v6238_v47 = vand.u32 4294901760, %v4737_v62  ;;  %v4948_v0 = vsub.f32 %v1522_v58, %v4942_v59  ;;  %v5027_v20 = vsub.f32 %v1516_v18, %v5016_v23  ;;  %v1508_v18 = vld [vmem:[%s6164_s3 + $0x8] sm:$0xff] }
 0x11d   : > { %1430 = vmatpush1.msra.mxu1 %v4676_v16  ;;  %1290 = vmatprep.subr.mxu0 %v914_v52  ;;  %v6241_v52 = vand.u32 4294901760, %v4786_v8  ;;  %v4959_v16 = vsub.f32 %v1521_v63, %v4950_v6 }
 0x11e   : > { %1432 = vmatprep.subr.mxu1 %v4687_v22  ;;  %1294 = vmatpush1.msra.mxu0 %v920_v57  ;;  %v6244_v57 = vand.u32 4294901760, %v4807_v12  ;;  %v6204_v11 = vand.u32 4294901760, %v4948_v0  ;;  %v1519_v22 = vld [vmem:[%s6164_s3 + $0x60] sm:$0xff]  ;;  %v6198_v50 = vand.u32 4294901760, %v5027_v20 }
 0x11f   : > { %1434 = vmatpush1.msra.mxu1 %v4699_v27  ;;  %1298 = vmatprep.subr.mxu0 %v6229_v33  ;;  %v6203_v27 = vand.u32 4294901760, %v4959_v16  ;;  %v4975_v31 = vand.u32 4294901760, %v1519_v22  ;;  %v6197_v33 = vand.u32 4294901760, %v5045_v34 }
 0x120   : > { %1436 = vmatprep.subr.mxu1 %v4709_v32  ;;  %1302 = vmatpush1.msra.mxu0 %v6230_v35  ;;  %v1634_v26 = vsub.f32 %v4948_v0, %v6204_v11  ;;  %v1518_v32 = vld [vmem:[%s6164_s3 + $0x58] sm:$0xff]  ;;  %v1676_v5 = vsub.f32 %v5027_v20, %v6198_v50 }
 0x121   : > { %1438 = vmatpush1.msra.mxu1 %v4719_v46  ;;  %1306 = vmatprep.subr.mxu0 %v6231_v37  ;;  %v1641_v42 = vsub.f32 %v4959_v16, %v6203_v27  ;;  %v6202_v46 = vand.u32 4294901760, %v4973_v30  ;;  %v4987_v51 = vsub.f32 %v1519_v22, %v4975_v31  ;;  %v4990_v55 = vand.u32 4294901760, %v1518_v32 }
 0x122   : > { %1440 = vmatprep.subr.mxu1 %v4729_v56  ;;  %1310 = vmatpush1.msra.mxu0 %v6232_v38  ;;  %v1635_v39 = vand.u32 4294901760, %v1634_v26  ;;  %v1517_v56 = vld [vmem:[%s6164_s3 + $0x50] sm:$0xff]  ;;  %v5063_v37 = vand.u32 4294901760, %v1513_v4  ;;  %v1512_v38 = vld [vmem:[%s6164_s3 + $0x28] sm:$0xff] }
 0x123   : > { %1442 = vmatpush1.msra.mxu1 %v4739_v1  ;;  %1314 = vmatprep.subr.mxu0 %v6233_v40  ;;  %v1648_v62 = vsub.f32 %v4973_v30, %v6202_v46  ;;  %v6201_v1 = vand.u32 4294901760, %v4987_v51  ;;  %v5000_v8 = vand.u32 4294901760, %v1517_v56  ;;  %v5004_v9 = vsub.f32 %v1518_v32, %v4990_v55  ;;  %v1509_v32 = vld [vmem:[%s6164_s3 + $0x10] sm:$0xff] }
 0x124   : > { %1444 = vmatprep.subr.mxu1 %v4771_v28  ;;  %1318 = vmatpush1.msra.mxu0 %v6234_v41  ;;  %v1677_v40 = vand.u32 4294901760, %v1676_v5  ;;  %v1683_v41 = vsub.f32 %v5045_v34, %v6197_v33 }
 0x125   : > { %1446 = vmatpush1.msra.mxu1 %v4780_v60  ;;  %1322 = vmatprep.subr.mxu0 %v6235_v43  ;;  %v1649_v19 = vand.u32 4294901760, %v1648_v62  ;;  %v1655_v28 = vsub.f32 %v4987_v51, %v6201_v1  ;;  %v5014_v60 = vsub.f32 %v1517_v56, %v5000_v8 }
 0x126   : > { %1448 = vmatprep.subr.mxu1 %v4788_v61  ;;  %1326 = vmatpush1.msra.mxu0 %v6236_v44  ;;  %v1642_v61 = vand.u32 4294901760, %v1641_v42  ;;  %v5074_v44 = vand.u32 4294901760, %v1512_v38 }
 0x127   : > { %1450 = vmatpush1.msra.mxu1 %v4797_v24  ;;  %1483 = vmatprep.mubr.f32.mxu1 %v6205_v3  ;;  %v6200_v24 = vand.u32 4294901760, %v5004_v9  ;;  %v1656_v12 = vand.u32 4294901760, %v1655_v28  ;;  %v6199_v7 = vand.u32 4294901760, %v5014_v60 }
 0x128   : > { %1330 = vmatprep.subr.mxu0 %v6237_v45  ;;  %1485 = vmatmul.mubr.f32.vlgmr.msra.gmra.mxu1 %v4829_v17  ;;  %v5078_v45 = vsub.f32 %v1513_v4, %v5063_v37 }
 0x129   : > { %1334 = vmatpush1.msra.mxu0 %v6238_v47  ;;  %1391 = vmatprep.mubr.f32.mxu0 %v6205_v3  ;;  %v1662_v14 = vsub.f32 %v5004_v9, %v6200_v24  ;;  %v1669_v25 = vsub.f32 %v5014_v60, %v6199_v7  ;;  %v1511_v47 = vld [vmem:[%s6164_s3 + $0x20] sm:$0xff]  ;;  %v1498_v24 = vpop.permute.xlu1 %1497 }
 0x12a   : > { %1338 = vmatprep.subr.mxu0 %v6239_v48  ;;  %1630 = vmatprep.subr.mxu1 %v6205_v3  ;;  %v1684_v48 = vand.u32 4294901760, %v1683_v41 }
 0x12b   : > { %1342 = vmatpush1.msra.mxu0 %v6240_v49  ;;  %1636 = vmatpush1.msra.mxu1 %v1635_v39  ;;  %v1663_v13 = vand.u32 4294901760, %v1662_v14  ;;  %v1670_v15 = vand.u32 4294901760, %v1669_v25  ;;  %v5138_v14 = vand.u32 4294901760, %v1508_v18 }
 0x12c   : > { %1346 = vmatprep.subr.mxu0 %v6241_v52  ;;  %1637 = vmatprep.subr.mxu1 %v6205_v3  ;;  %v5089_v52 = vsub.f32 %v1512_v38, %v5074_v44  ;;  %v1526_v38 = vld [vmem:[%s6164_s3 + $0x98] sm:$0xff] }
 0x12d   : > { %1350 = vmatpush1.msra.mxu0 %v6242_v53  ;;  %1643 = vmatpush1.msra.mxu1 %v1642_v61  ;;  %v5091_v53 = vand.u32 4294901760, %v1511_v47  ;;  %v5122_v61 = vand.u32 4294901760, %v1509_v32  ;;  %v5153_v5 = vsub.f32 %v1508_v18, %v5138_v14  ;;  %v1524_v18 = vld [vmem:[%s6164_s3 + $0x88] sm:$0xff] }
 0x12e   : > { %1354 = vmatprep.subr.mxu0 %v6243_v54  ;;  %1644 = vmatprep.subr.mxu1 %v6205_v3  ;;  %v6195_v54 = vand.u32 4294901760, %v5078_v45  ;;  %v6193_v63 = vand.u32 4294901760, %v5089_v52 }
 0x12f   : > { %1358 = vmatpush1.msra.mxu0 %v6244_v57  ;;  %1650 = vmatpush1.msra.mxu1 %v1649_v19  ;;  %v1510_v57 = vld [vmem:[%s6164_s3 + $0x18] sm:$0xff]  ;;  %v5102_v10 = vsub.f32 %v1511_v47, %v5091_v53 }
 0x130   : > { %1393 = vmatmul.mubr.f32.vlgmr.msra.gmra.mxu0 %v4829_v17  ;;  %1530 = vmatprep.subr.mxu0 %v6205_v3  ;;  %v5047_v17 = vand.u32 4294901760, %v1514_v2  ;;  %v5104_v22 = vand.u32 4294901760, %v1510_v57  ;;  %v1697_v26 = vsub.f32 %v5078_v45, %v6195_v54  ;;  %v1704_v39 = vsub.f32 %v5089_v52, %v6193_v63 }
 0x131   : > { %1532 = vmatpush1.msra.mxu0 %v4942_v59  ;;  %1651 = vmatprep.subr.mxu1 %v6205_v3  ;;  %v6192_v42 = vand.u32 4294901760, %v5102_v10 }
 0x132   : > { %1533 = vmatprep.subr.mxu0 %v6205_v3  ;;  %1657 = vmatpush1.msra.mxu1 %v1656_v12  ;;  %v5060_v35 = vsub.f32 %v1514_v2, %v5047_v17  ;;  %v5120_v56 = vsub.f32 %v1510_v57, %v5104_v22  ;;  %v1698_v62 = vand.u32 4294901760, %v1697_v26  ;;  %v1705_v19 = vand.u32 4294901760, %v1704_v39  ;;  %v1507_v2 = vld [vmem:[%s6164_s3] sm:$0xff]  ;;  %v1525_v57 = vld [vmem:[%s6164_s3 + $0x90] sm:$0xff] }
 0x133   : > { %1535 = vmatpush1.msra.mxu0 %v4950_v6  ;;  %1658 = vmatprep.subr.mxu1 %v6205_v3  ;;  %v1711_v28 = vsub.f32 %v5102_v10, %v6192_v42  ;;  %v5135_v12 = vsub.f32 %v1509_v32, %v5122_v61  ;;  %v5176_v32 = vand.u32 4294901760, %v1525_v57 }
 0x134   : > { %1536 = vmatprep.subr.mxu0 %v6205_v3  ;;  %1664 = vmatpush1.msra.mxu1 %v1663_v13  ;;  %v6196_v43 = vand.u32 4294901760, %v5060_v35  ;;  %v6191_v36 = vand.u32 4294901760, %v5120_v56 }
 0x135   : > { %1538 = vmatpush1.msra.mxu0 %v4961_v21  ;;  %1665 = vmatprep.subr.mxu1 %v6205_v3  ;;  %v1712_v25 = vand.u32 4294901760, %v1711_v28  ;;  %v6190_v4 = vand.u32 4294901760, %v5135_v12  ;;  %v5194_v28 = vsub.f32 %v1525_v57, %v5176_v32 }
 0x136   : > { %1539 = vmatprep.subr.mxu0 %v6205_v3  ;;  %1671 = vmatpush1.msra.mxu1 %v1670_v15  ;;  %v1690_v49 = vsub.f32 %v5060_v35, %v6196_v43  ;;  %v1718_v13 = vsub.f32 %v5120_v56, %v6191_v36  ;;  %v5149_v15 = vand.u32 4294901760, %v1507_v2  ;;  %v4304_v43 = vld [vmem:[%s4509_s8] sm:$0xff] }
 0x137   : > { %1541 = vmatpush1.msra.mxu0 %v4975_v31  ;;  %1672 = vmatprep.subr.mxu1 %v6205_v3  ;;  %v1725_v41 = vsub.f32 %v5135_v12, %v6190_v4 }
 0x138   : > { %1542 = vmatprep.subr.mxu0 %v6205_v3  ;;  %1678 = vmatpush1.msra.mxu1 %v1677_v40  ;;  %v1691_v58 = vand.u32 4294901760, %v1690_v49  ;;  %v1719_v40 = vand.u32 4294901760, %v1718_v13  ;;  %v5164_v47 = vsub.f32 %v1507_v2, %v5149_v15  ;;  %v5168_v49 = vand.u32 4294901760, %v1526_v38 }
 0x139   : > { %1544 = vmatpush1.msra.mxu0 %v4990_v55  ;;  %1679 = vmatprep.subr.mxu1 %v6205_v3  ;;  %v5196_v2 = vand.u32 4294901760, %v1524_v18 }
 0x13a   : > { %1545 = vmatprep.subr.mxu0 %v6205_v3  ;;  %1685 = vmatpush1.msra.mxu1 %v1684_v48  ;;  %v6187_v48 = vand.u32 4294901760, %v5153_v5  ;;  %v6185_v26 = vand.u32 4294901760, %v5164_v47 }
 0x13b   : > { %1547 = vmatpush1.msra.mxu0 %v5000_v8  ;;  %1686 = vmatprep.subr.mxu1 %v6205_v3  ;;  %v5207_v57 = vsub.f32 %v1524_v18, %v5196_v2 }
 0x13c   : > { %1548 = vmatprep.subr.mxu0 %v6205_v3  ;;  %1692 = vmatpush1.msra.mxu1 %v1691_v58  ;;  %v1726_v58 = vand.u32 4294901760, %v1725_v41  ;;  %v1732_v39 = vsub.f32 %v5153_v5, %v6187_v48  ;;  %v6188_v41 = vand.u32 4294901760, %v5194_v28 }
 0x13d   : > { %1550 = vmatpush1.msra.mxu0 %v5016_v23  ;;  %1693 = vmatprep.subr.mxu1 %v6205_v3  ;;  %v6189_v18 = vand.u32 4294901760, %v5207_v57 }
 0x13e   : > { %1551 = vmatprep.subr.mxu0 %v6205_v3  ;;  %1699 = vmatpush1.msra.mxu1 %v1698_v62  ;;  %v5183_v62 = vsub.f32 %v1526_v38, %v5168_v49  ;;  %v1523_v38 = vld [vmem:[%s6164_s3 + $0x80] sm:$0xff] }
 0x13f   : > { %1553 = vmatpush1.msra.mxu0 %v5029_v29  ;;  %1700 = vmatprep.subr.mxu1 %v6205_v3  ;;  %v1784_v48 = vsub.f32 %v5207_v57, %v6189_v18 }
 0x140   : > { %1554 = vmatprep.subr.mxu0 %v6205_v3  ;;  %1706 = vmatpush1.msra.mxu1 %v1705_v19  ;;  %v1739_v19 = vsub.f32 %v5164_v47, %v6185_v26  ;;  %v6186_v13 = vand.u32 4294901760, %v5183_v62  ;;  %v5209_v26 = vand.u32 4294901760, %v1523_v38 }
 0x141   : > { %1556 = vmatpush1.msra.mxu0 %v5047_v17  ;;  %1707 = vmatprep.subr.mxu1 %v6205_v3 }
 0x142   : > { %1557 = vmatprep.subr.mxu0 %v6205_v3  ;;  %1713 = vmatpush1.msra.mxu1 %v1712_v25  ;;  %v1733_v25 = vand.u32 4294901760, %v1732_v39  ;;  %v1777_v39 = vsub.f32 %v5194_v28, %v6188_v41 }
 0x143   : > { %1559 = vmatpush1.msra.mxu0 %v5063_v37  ;;  %1714 = vmatprep.subr.mxu1 %v6205_v3 }
 0x144   : > { %1560 = vmatprep.subr.mxu0 %v6205_v3  ;;  %1720 = vmatpush1.msra.mxu1 %v1719_v40  ;;  %v1740_v40 = vand.u32 4294901760, %v1739_v19 }
 0x145   : > { %1562 = vmatpush1.msra.mxu0 %v5074_v44  ;;  %1721 = vmatprep.subr.mxu1 %v6205_v3 }
 0x146   : > { %1563 = vmatprep.subr.mxu0 %v6205_v3  ;;  %1727 = vmatpush1.msra.mxu1 %v1726_v58  ;;  %v1770_v58 = vsub.f32 %v5183_v62, %v6186_v13  ;;  %v1778_v13 = vand.u32 4294901760, %v1777_v39 }
 0x147   : > { %1565 = vmatpush1.msra.mxu0 %v5091_v53  ;;  %1728 = vmatprep.subr.mxu1 %v6205_v3 }
 0x148   : > { %1566 = vmatprep.subr.mxu0 %v6205_v3  ;;  %1734 = vmatpush1.msra.mxu1 %v1733_v25  ;;  %v1771_v19 = vand.u32 4294901760, %v1770_v58  ;;  %v5223_v25 = vsub.f32 %v1523_v38, %v5209_v26 }
 0x149   : > { %1568 = vmatpush1.msra.mxu0 %v5104_v22  ;;  %1735 = vmatprep.subr.mxu1 %v6205_v3 }
 0x14a   : > { %1569 = vmatprep.subr.mxu0 %v6205_v3  ;;  %1741 = vmatpush1.msra.mxu1 %v1740_v40  ;;  %v6194_v41 = vand.u32 4294901760, %v5223_v25  ;;  %v1785_v40 = vand.u32 4294901760, %v1784_v48  ;;  %v1492_v48 = vpop.permute.xlu0 %1491 }
 0x14b   : > { %1571 = vmatpush1.msra.mxu0 %v5122_v61  ;;  %1766 = vmatprep.subr.mxu1 %v6205_v3 }
 0x14c   : > { %1572 = vmatprep.subr.mxu0 %v6205_v3  ;;  %1772 = vmatpush2.msra.mxu1 %v1771_v19  ;;  %v1791_v38 = vsub.f32 %v5223_v25, %v6194_v41 }
 0x14d   : > { %1574 = vmatpush1.msra.mxu0 %v5138_v14  ;;  %1773 = vmatprep.subr.mxu1 %v6205_v3 }
 0x14e   : > { %1575 = vmatprep.subr.mxu0 %v6205_v3  ;;  %1779 = vmatpush2.msra.mxu1 %v1778_v13  ;;  %v1792_v58 = vand.u32 4294901760, %v1791_v38  ;;  %v1495_v38 = vpop.permute.xlu0 %1494 }
 0x14f   : > { %1577 = vmatpush1.msra.mxu0 %v5149_v15  ;;  %1780 = vmatprep.subr.mxu1 %v6205_v3 }
 0x150   : > { %1602 = vmatprep.subr.mxu0 %v6205_v3  ;;  %1786 = vmatpush2.msra.mxu1 %v1785_v40  ;;  %v1500_v40 = vsel %vm279_vm1, %v4304_v43, %v1492_v48 }
 0x151   : > { %1604 = vmatpush2.msra.mxu0 %v5168_v49  ;;  %1787 = vmatprep.subr.mxu1 %v6205_v3  ;;  %v1502_v7 = vsel %vm1501_vm3, %v1500_v40, %v1495_v38 }
 0x152   : > { %1605 = vmatprep.subr.mxu0 %v6205_v3  ;;  %1793 = vmatpush2.msra.mxu1 %v1792_v58 }
 0x153   : > { %1607 = vmatpush2.msra.mxu0 %v5176_v32  ;;  %1916 = vmatprep.subr.mxu1 %v6205_v3 }
 0x154   : > { %1608 = vmatprep.subr.mxu0 %v6205_v3 }
 0x155   : > { %1610 = vmatpush2.msra.mxu0 %v5196_v2 }
 0x156   : > { %1611 = vmatprep.subr.mxu0 %v6205_v3 }
 0x157   : > { %1613 = vmatpush2.msra.mxu0 %v5209_v26 }
 0x158   : > { %1802 = vmatprep.subr.mxu0 %v6205_v3 }
 0x1be   : > { %v1055_v19 = vpop.f32.mrf.mxu1 }
 0x1c0   : > { %v1057_v13 = vpop.f32.mrf.mxu1 }
 0x1c6   : > { %v883_v39 = vpop.f32.mrf.mxu0 }
 0x1c7   : > { %v1056_v36 = vadd.f32 %v1055_v19, %v883_v39  ;;  %v5241_v19 = vsel %vm1503_vm4, %v1502_v7, %v1498_v24 }
 0x1c8   : > { %v885_v18 = vpop.f32.mrf.mxu0 }
 0x1c9   : > { %v1058_v41 = vadd.f32 %v1057_v13, %v885_v18 }
 0x1d2   : > { %v1262_v42 = vpop.f32.mrf.mxu1 }
 0x1d4   : > { %v1264_v58 = vpop.f32.mrf.mxu1 }
 0x1db   : > { %v1168_v4 = vpop.f32.mrf.mxu0 }
 0x1dc   : > { %v1169_v54 = vadd.f32 %v1168_v4, %v1056_v36 }
 0x1dd   : > { %v1170_v63 = vpop.f32.mrf.mxu0 }
 0x1de   : > { %v1171_v33 = vadd.f32 %v1170_v63, %v1058_v41  ;;  %v1263_v50 = vadd.f32 %v1262_v42, %v1169_v54 }
 0x1e0   : > { %v1265_v11 = vadd.f32 %v1264_v58, %v1171_v33  ;;  %v6263_v33 = vand.u32 4294901760, %v5194_v28 }
 0x1e8   : > { %v1486_v1 = vpop.f32.mrf.mxu1 }
 0x1ea   : > { %v1488_v4 = vpop.f32.mrf.mxu1 }
 0x1f0   : > { %v1394_v46 = vpop.f32.mrf.mxu0 }
 0x1f1   : > { %v1395_v27 = vadd.f32 %v1394_v46, %v1263_v50 }
 0x1f2   : > { %v1396_v39 = vpop.f32.mrf.mxu0 }
 0x1f3   : > { %v1487_v18 = vadd.f32 %v1486_v1, %v1395_v27  ;;  %v1397_v36 = vadd.f32 %v1396_v39, %v1265_v11  ;;  %v6245_v27 = vmov 0.0  }
 0x1f5   : > { %v1489_v13 = vadd.f32 %v1488_v4, %v1397_v36  ;;  %v1505_v48 = vmul.f32 %v5241_v19, %v1487_v18 }
 0x1f7   : > { %v1506_v3 = vmul.f32 %v4304_v43, %v1489_v13  ;;  %v5244_v63 = vand.u32 4294901760, %v1505_v48 }
 0x1f9   : > { %v1528_v54 = vsel %vm279_vm1, %v1506_v3, 0  ;;  %v5248_v42 = vsub.f32 %v1505_v48, %v5244_v63 }
 0x1fa   : > { %v5250_v41 = vand.u32 4294901760, %v1528_v54 }
 0x1fb   : > { %v1622_v46 = vand.u32 4294901760, %v5248_v42 }
 0x1fc   : > { %v1615_v24 = vsub.f32 %v1528_v54, %v5250_v41  ;;  %1795 = vmatprep.mubr.f32.mxu1 %v5250_v41 }
 0x1fd   : > { %1797 = vmatmul.mubr.f32.vlgmr.msra.gmra.mxu1 %v5244_v63  ;;  %v1623_v3 = vsub.f32 %v5248_v42, %v1622_v46 }
 0x1fe   : > { %1918 = vmatpush1.msra.mxu1 %v4942_v59  ;;  %v1616_v11 = vand.u32 4294901760, %v1615_v24 }
 0x1ff   : > { %1919 = vmatprep.subr.mxu1 %v6245_v27  ;;  %v1624_v50 = vand.u32 4294901760, %v1623_v3 }
 0x200   : > { %1921 = vmatpush1.msra.mxu1 %v4950_v6  ;;  %2003 = vmatprep.mubr.f32.mxu1 %v1616_v11  ;;  %v1617_v1 = vsub.f32 %v1615_v24, %v1616_v11 }
 0x201   : > { %1922 = vmatprep.subr.mxu1 %v6245_v27 }
 0x202   : > { %1924 = vmatpush1.msra.mxu1 %v4961_v21  ;;  %v1618_v7 = vand.u32 4294901760, %v1617_v1 }
 0x203   : > { %1925 = vmatprep.subr.mxu1 %v6245_v27 }
 0x204   : > { %1927 = vmatpush1.msra.mxu1 %v4975_v31  ;;  %1619 = vmatprep.mubr.f32.mxu0 %v1618_v7 }
 0x205   : > { %1928 = vmatprep.subr.mxu1 %v6245_v27  ;;  %1625 = vmatmul.mubr.f32.vlgmr.msra.gmra.mxu0 %v1624_v50 }
 0x206   : > { %1805 = vmatpush1.msra.mxu0 %v4948_v0  ;;  %1930 = vmatpush1.msra.mxu1 %v4990_v55 }
 0x207   : > { %1806 = vmatprep.subr.mxu0 %v6245_v27  ;;  %1908 = vmatprep.mubr.f32.mxu0 %v1615_v24 }
 0x208   : > { %1931 = vmatprep.subr.mxu1 %v6245_v27  ;;  %1809 = vmatpush1.msra.mxu0 %v4959_v16 }
 0x209   : > { %1933 = vmatpush1.msra.mxu1 %v5000_v8  ;;  %1810 = vmatprep.subr.mxu0 %v6245_v27 }
 0x20a   : > { %1934 = vmatprep.subr.mxu1 %v6245_v27  ;;  %1813 = vmatpush1.msra.mxu0 %v4973_v30 }
 0x20b   : > { %1936 = vmatpush1.msra.mxu1 %v5016_v23  ;;  %1814 = vmatprep.subr.mxu0 %v6245_v27 }
 0x20c   : > { %1937 = vmatprep.subr.mxu1 %v6245_v27  ;;  %1817 = vmatpush1.msra.mxu0 %v4987_v51 }
 0x20d   : > { %1939 = vmatpush1.msra.mxu1 %v5029_v29  ;;  %1818 = vmatprep.subr.mxu0 %v6245_v27 }
 0x20e   : > { %1940 = vmatprep.subr.mxu1 %v6245_v27  ;;  %1821 = vmatpush1.msra.mxu0 %v5004_v9 }
 0x20f   : > { %1942 = vmatpush1.msra.mxu1 %v5047_v17  ;;  %1822 = vmatprep.subr.mxu0 %v6245_v27 }
 0x210   : > { %1943 = vmatprep.subr.mxu1 %v6245_v27  ;;  %1825 = vmatpush1.msra.mxu0 %v5014_v60 }
 0x211   : > { %1945 = vmatpush1.msra.mxu1 %v5063_v37  ;;  %1826 = vmatprep.subr.mxu0 %v6245_v27 }
 0x212   : > { %1946 = vmatprep.subr.mxu1 %v6245_v27  ;;  %1829 = vmatpush1.msra.mxu0 %v5027_v20 }
 0x213   : > { %1948 = vmatpush1.msra.mxu1 %v5074_v44  ;;  %1830 = vmatprep.subr.mxu0 %v6245_v27 }
 0x214   : > { %1949 = vmatprep.subr.mxu1 %v6245_v27  ;;  %1833 = vmatpush1.msra.mxu0 %v5045_v34 }
 0x215   : > { %1951 = vmatpush1.msra.mxu1 %v5091_v53  ;;  %1834 = vmatprep.subr.mxu0 %v6245_v27 }
 0x216   : > { %1952 = vmatprep.subr.mxu1 %v6245_v27  ;;  %1837 = vmatpush1.msra.mxu0 %v5060_v35 }
 0x217   : > { %1954 = vmatpush1.msra.mxu1 %v5104_v22  ;;  %1838 = vmatprep.subr.mxu0 %v6245_v27 }
 0x218   : > { %1955 = vmatprep.subr.mxu1 %v6245_v27  ;;  %1841 = vmatpush1.msra.mxu0 %v5078_v45 }
 0x219   : > { %1957 = vmatpush1.msra.mxu1 %v5122_v61  ;;  %1842 = vmatprep.subr.mxu0 %v6245_v27 }
 0x21a   : > { %1958 = vmatprep.subr.mxu1 %v6245_v27  ;;  %1845 = vmatpush1.msra.mxu0 %v5089_v52 }
 0x21b   : > { %1960 = vmatpush1.msra.mxu1 %v5138_v14  ;;  %1846 = vmatprep.subr.mxu0 %v6245_v27 }
 0x21c   : > { %1961 = vmatprep.subr.mxu1 %v6245_v27  ;;  %1849 = vmatpush1.msra.mxu0 %v5102_v10 }
 0x21d   : > { %1963 = vmatpush1.msra.mxu1 %v5149_v15  ;;  %1850 = vmatprep.subr.mxu0 %v6245_v27 }
 0x21e   : > { %1988 = vmatprep.subr.mxu1 %v6245_v27  ;;  %1853 = vmatpush1.msra.mxu0 %v5120_v56 }
 0x21f   : > { %1990 = vmatpush2.msra.mxu1 %v5168_v49  ;;  %1854 = vmatprep.subr.mxu0 %v6245_v27 }
 0x220   : > { %1991 = vmatprep.subr.mxu1 %v6245_v27  ;;  %1857 = vmatpush1.msra.mxu0 %v5135_v12 }
 0x221   : > { %1993 = vmatpush2.msra.mxu1 %v5176_v32  ;;  %1858 = vmatprep.subr.mxu0 %v6245_v27 }
 0x222   : > { %1994 = vmatprep.subr.mxu1 %v6245_v27  ;;  %1861 = vmatpush1.msra.mxu0 %v5153_v5 }
 0x223   : > { %1996 = vmatpush2.msra.mxu1 %v5196_v2  ;;  %1862 = vmatprep.subr.mxu0 %v6245_v27 }
 0x224   : > { %1997 = vmatprep.subr.mxu1 %v6245_v27  ;;  %1865 = vmatpush1.msra.mxu0 %v5164_v47 }
 0x225   : > { %1999 = vmatpush2.msra.mxu1 %v5209_v26  ;;  %1890 = vmatprep.subr.mxu0 %v6245_v27 }
 0x226   : > { %2007 = vmatmul.mubr.f32.vlgmr.msra.gmra.mxu1 %v1622_v46  ;;  %2144 = vmatprep.subr.mxu1 %v6245_v27 }
 0x227   : > { %1893 = vmatpush2.msra.mxu0 %v5183_v62  ;;  %2146 = vmatpush1.msra.mxu1 %v4942_v59  ;;  %v6246_v59 = vand.u32 4294901760, %v4948_v0  ;;  %v6248_v0 = vand.u32 4294901760, %v4973_v30  ;;  %v6251_v30 = vand.u32 4294901760, %v5014_v60  ;;  %v6257_v60 = vand.u32 4294901760, %v5102_v10 }
 0x228   : > { %2229 = vmatprep.mubr.f32.mxu1 %v5250_v41  ;;  %1894 = vmatprep.subr.mxu0 %v6245_v27 }
 0x229   : > { %2147 = vmatprep.subr.mxu1 %v6245_v27  ;;  %1897 = vmatpush2.msra.mxu0 %v5194_v28 }
 0x22a   : > { %2149 = vmatpush1.msra.mxu1 %v4950_v6  ;;  %1898 = vmatprep.subr.mxu0 %v6245_v27  ;;  %v6247_v6 = vand.u32 4294901760, %v4959_v16  ;;  %v6250_v16 = vand.u32 4294901760, %v5004_v9  ;;  %v6256_v9 = vand.u32 4294901760, %v5089_v52 }
 0x22b   : > { %2150 = vmatprep.subr.mxu1 %v6245_v27  ;;  %1901 = vmatpush2.msra.mxu0 %v5207_v57 }
 0x22c   : > { %2152 = vmatpush1.msra.mxu1 %v4961_v21  ;;  %1902 = vmatprep.subr.mxu0 %v6245_v27  ;;  %v6249_v21 = vand.u32 4294901760, %v4987_v51  ;;  %v6253_v51 = vand.u32 4294901760, %v5045_v34  ;;  %v6261_v34 = vand.u32 4294901760, %v5164_v47 }
 0x22d   : > { %2153 = vmatprep.subr.mxu1 %v6245_v27  ;;  %1905 = vmatpush2.msra.mxu0 %v5223_v25 }
 0x22e   : > { %2155 = vmatpush1.msra.mxu1 %v4975_v31  ;;  %1911 = vmatmul.mubr.f32.vlgmr.msra.gmra.mxu0 %v5248_v42  ;;  %v6252_v31 = vand.u32 4294901760, %v5027_v20  ;;  %v6259_v20 = vand.u32 4294901760, %v5135_v12 }
 0x22f   : > { %2012 = vmatprep.subr.mxu0 %v6245_v27  ;;  %2156 = vmatprep.subr.mxu1 %v6245_v27 }
 0x230   : > { %2016 = vmatpush1.msra.mxu0 %v6246_v59  ;;  %2137 = vmatprep.mubr.f32.mxu0 %v5250_v41 }
 0x231   : > { %2158 = vmatpush1.msra.mxu1 %v4990_v55  ;;  %2017 = vmatprep.subr.mxu0 %v6245_v27  ;;  %v6254_v55 = vand.u32 4294901760, %v5060_v35  ;;  %v6264_v35 = vand.u32 4294901760, %v5207_v57  ;;  %v2245_v57 = vld [vmem:[%s6165_s4 + $0x8] sm:$0xff] }
 0x232   : > { %2159 = vmatprep.subr.mxu1 %v6245_v27  ;;  %2021 = vmatpush1.msra.mxu0 %v6247_v6  ;;  %v2284_v38 = vand.u32 4294901760, %v2245_v57 }
 0x233   : > { %2161 = vmatpush1.msra.mxu1 %v5000_v8  ;;  %2022 = vmatprep.subr.mxu0 %v6245_v27  ;;  %v6255_v8 = vand.u32 4294901760, %v5078_v45 }
 0x234   : > { %2162 = vmatprep.subr.mxu1 %v6245_v27  ;;  %2026 = vmatpush1.msra.mxu0 %v6248_v0  ;;  %v5461_v18 = vsub.f32 %v2245_v57, %v2284_v38 }
 0x235   : > { %2164 = vmatpush1.msra.mxu1 %v5016_v23  ;;  %2027 = vmatprep.subr.mxu0 %v6245_v27  ;;  %v6258_v23 = vand.u32 4294901760, %v5120_v56 }
 0x236   : > { %2165 = vmatprep.subr.mxu1 %v6245_v27  ;;  %2031 = vmatpush1.msra.mxu0 %v6249_v21  ;;  %v2368_v13 = vand.u32 4294901760, %v5461_v18 }
 0x237   : > { %2167 = vmatpush1.msra.mxu1 %v5029_v29  ;;  %2032 = vmatprep.subr.mxu0 %v6245_v27  ;;  %v6260_v29 = vand.u32 4294901760, %v5153_v5 }
 0x238   : > { %2168 = vmatprep.subr.mxu1 %v6245_v27  ;;  %2036 = vmatpush1.msra.mxu0 %v6250_v16  ;;  %v2369_v54 = vsub.f32 %v5461_v18, %v2368_v13 }
 0x239   : > { %2170 = vmatpush1.msra.mxu1 %v5047_v17  ;;  %2037 = vmatprep.subr.mxu0 %v6245_v27  ;;  %v6262_v17 = vand.u32 4294901760, %v5183_v62 }
 0x23a   : > { %2171 = vmatprep.subr.mxu1 %v6245_v27  ;;  %2041 = vmatpush1.msra.mxu0 %v6251_v30  ;;  %v2370_v24 = vand.u32 4294901760, %v2369_v54 }
 0x23b   : > { %2173 = vmatpush1.msra.mxu1 %v5063_v37  ;;  %2042 = vmatprep.subr.mxu0 %v6245_v27  ;;  %v6265_v37 = vand.u32 4294901760, %v5223_v25  ;;  %v2244_v25 = vld [vmem:[%s6165_s4] sm:$0xff] }
 0x23c   : > { %2174 = vmatprep.subr.mxu1 %v6245_v27  ;;  %2046 = vmatpush1.msra.mxu0 %v6252_v31  ;;  %v2287_v58 = vand.u32 4294901760, %v2244_v25  ;;  %v2733_v31 = vld [vmem:[%s6166_s5 + $0x28] sm:$0xf] }
 0x23d   : > { %2176 = vmatpush1.msra.mxu1 %v5074_v44  ;;  %2047 = vmatprep.subr.mxu0 %v6245_v27 }
 0x23e   : > { %2177 = vmatprep.subr.mxu1 %v6245_v27  ;;  %2051 = vmatpush1.msra.mxu0 %v6253_v51  ;;  %v5463_v36 = vsub.f32 %v2244_v25, %v2287_v58  ;;  %v2732_v51 = vld [vmem:[%s6166_s5 + $0x20] sm:$0xf] }
 0x23f   : > { %2179 = vmatpush1.msra.mxu1 %v5091_v53  ;;  %2052 = vmatprep.subr.mxu0 %v6245_v27 }
 0x240   : > { %2180 = vmatprep.subr.mxu1 %v6245_v27  ;;  %2056 = vmatpush1.msra.mxu0 %v6254_v55  ;;  %v2375_v48 = vand.u32 4294901760, %v5463_v36  ;;  %v2731_v55 = vld [vmem:[%s6166_s5 + $0x18] sm:$0xff] }
 0x241   : > { %2182 = vmatpush1.msra.mxu1 %v5104_v22  ;;  %2057 = vmatprep.subr.mxu0 %v6245_v27 }
 0x242   : > { %2183 = vmatprep.subr.mxu1 %v6245_v27  ;;  %2061 = vmatpush1.msra.mxu0 %v6255_v8  ;;  %v2376_v41 = vsub.f32 %v5463_v36, %v2375_v48  ;;  %v2741_v8 = vsel %vm2250_vm6, %v2733_v31, 0 }
 0x243   : > { %2185 = vmatpush1.msra.mxu1 %v5122_v61  ;;  %2062 = vmatprep.subr.mxu0 %v6245_v27 }
 0x244   : > { %2186 = vmatprep.subr.mxu1 %v6245_v27  ;;  %2066 = vmatpush1.msra.mxu0 %v6256_v9  ;;  %v2377_v11 = vand.u32 4294901760, %v2376_v41  ;;  %v2738_v9 = vsel %vm2250_vm6, %v2732_v51, 0  ;;  %v3275_v51 = vld [vmem:[%s6167_s6 + $0x68] sm:$0xff] }
 0x245   : > { %2188 = vmatpush1.msra.mxu1 %v5138_v14  ;;  %2067 = vmatprep.subr.mxu0 %v6245_v27 }
 0x246   : > { %2189 = vmatprep.subr.mxu1 %v6245_v27  ;;  %2071 = vmatpush1.msra.mxu0 %v6257_v60  ;;  %v5512_v60 = vand.u32 4294901760, %v2731_v55 }
 0x247   : > { %2191 = vmatpush1.msra.mxu1 %v5149_v15  ;;  %2072 = vmatprep.subr.mxu0 %v6245_v27 }
 0x248   : > { %2216 = vmatprep.subr.mxu1 %v6245_v27  ;;  %2076 = vmatpush1.msra.mxu0 %v6258_v23  ;;  %v2730_v23 = vld [vmem:[%s6166_s5 + $0x10] sm:$0xff] }
 0x249   : > { %2218 = vmatpush2.msra.mxu1 %v5168_v49  ;;  %2077 = vmatprep.subr.mxu0 %v6245_v27 }
 0x24a   : > { %2219 = vmatprep.subr.mxu1 %v6245_v27  ;;  %2081 = vmatpush1.msra.mxu0 %v6259_v20  ;;  %v2729_v20 = vld [vmem:[%s6166_s5 + $0x8] sm:$0xff] }
 0x24b   : > { %2221 = vmatpush2.msra.mxu1 %v5176_v32  ;;  %2082 = vmatprep.subr.mxu0 %v6245_v27 }
 0x24c   : > { %2222 = vmatprep.subr.mxu1 %v6245_v27  ;;  %2086 = vmatpush1.msra.mxu0 %v6260_v29  ;;  %v5520_v29 = vand.u32 4294901760, %v2741_v8 }
 0x24d   : > { %2224 = vmatpush2.msra.mxu1 %v5196_v2  ;;  %2087 = vmatprep.subr.mxu0 %v6245_v27  ;;  %v2246_v2 = vld [vmem:[%s6165_s4 + $0x10] sm:$0xf] }
 0x24e   : > { %2225 = vmatprep.subr.mxu1 %v6245_v27  ;;  %2091 = vmatpush1.msra.mxu0 %v6261_v34  ;;  %v2252_v40 = vsel %vm2250_vm6, %v2246_v2, 0  ;;  %v5522_v34 = vand.u32 4294901760, %v2738_v9 }
 0x24f   : > { %2227 = vmatpush2.msra.mxu1 %v5209_v26  ;;  %2116 = vmatprep.subr.mxu0 %v6245_v27  ;;  %v2281_v39 = vand.u32 4294901760, %v2252_v40 }
 0x250   : > { %2231 = vmatmul.mubr.f32.vlgmr.msra.gmra.mxu1 %v5244_v63  ;;  %2120 = vmatpush2.msra.mxu0 %v6262_v17  ;;  %v5524_v17 = vand.u32 4294901760, %v2730_v23 }
 0x251   : > { %2121 = vmatprep.subr.mxu0 %v6245_v27  ;;  %4210 = vmatprep.subr.mxu1 %v6245_v27  ;;  %v2360_v4 = vsub.f32 %v2252_v40, %v2281_v39 }
 0x252   : > { %2125 = vmatpush2.msra.mxu0 %v6263_v33  ;;  %4216 = vmatprep.mubr.msk.f32.mxu1 %vm4369_vm0, %v6245_v27  ;;  %v5526_v33 = vand.u32 4294901760, %v2729_v20 }
 0x253   : > { %2126 = vmatprep.subr.mxu0 %v6245_v27 }
 0x254   : > { %2130 = vmatpush2.msra.mxu0 %v6264_v35  ;;  %v5529_v35 = vsub.f32 %v2731_v55, %v5512_v60 }
 0x255   : > { %2131 = vmatprep.subr.mxu0 %v6245_v27 }
 0x256   : > { %2135 = vmatpush2.msra.mxu0 %v6265_v37  ;;  %v5532_v37 = vsub.f32 %v2741_v8, %v5520_v29 }
 0x257   : > { %2139 = vmatmul.mubr.f32.vlgmr.msra.gmra.mxu0 %v5244_v63  ;;  %4201 = vmatprep.subr.mxu0 %v6245_v27  ;;  %v2361_v63 = vand.u32 4294901760, %v2360_v4 }
 0x258   : > { %4207 = vmatprep.mubr.msk.f32.mxu0 %vm4369_vm0, %v6245_v27  ;;  %4202 = vmatpush3.msra.mxu0 %v2281_v39 }
 0x259   : > { %4203 = vmatprep.subr.mxu0 %v6245_v27  ;;  %v2362_v42 = vsub.f32 %v2360_v4, %v2361_v63 }
 0x25a   : > { %4204 = vmatpush3.msra.mxu0 %v2284_v38 }
 0x25b   : > { %4205 = vmatprep.subr.mxu0 %v6245_v27  ;;  %v2363_v46 = vand.u32 4294901760, %v2362_v42 }
 0x25c   : > { %4206 = vmatpush3.msra.mxu0 %v2287_v58 }
 0x25d   : > { %4219 = vmatprep.subr.mxu0 %v6245_v27  ;;  %4211 = vmatpush3.msra.mxu1 %v2363_v46 }
 0x25e   : > { %4212 = vmatprep.subr.mxu1 %v6245_v27 }
 0x25f   : > { %4213 = vmatpush3.msra.mxu1 %v2370_v24 }
 0x260   : > { %4214 = vmatprep.subr.mxu1 %v6245_v27 }
 0x261   : > { %4215 = vmatpush3.msra.mxu1 %v2377_v11 }
 0x262   : > { %4228 = vmatprep.subr.mxu1 %v6245_v27 }
 0x2bd   : > { %v1798_v43 = vpop.f32.mrf.mxu1 }
 0x2bf   : > { %v1800_v44 = vpop.f32.mrf.mxu1 }
 0x2c0   : > { %v5538_v44 = vsub.f32 %v2730_v23, %v5524_v17  ;;  %v5606_v23 = vand.u32 4294901760, %v3275_v51 }
 0x2c5   : > { %v1626_v45 = vpop.f32.mrf.mxu0 }
 0x2c6   : > { %v1799_v52 = vadd.f32 %v1798_v43, %v1626_v45  ;;  %v5535_v43 = vsub.f32 %v2738_v9, %v5522_v34  ;;  %v5541_v45 = vsub.f32 %v2729_v20, %v5526_v33 }
 0x2c7   : > { %v1628_v53 = vpop.f32.mrf.mxu0 }
 0x2c8   : > { %v2853_v53 = vand.u32 4294901760, %v5532_v37 }
 0x2e6   : > { %v2008_v10 = vpop.f32.mrf.mxu1 }
 0x2e8   : > { %v2010_v22 = vpop.f32.mrf.mxu1 }
 0x2e9   : > { %v2871_v22 = vand.u32 4294901760, %v5538_v44 }
 0x2ee   : > { %v1912_v56 = vpop.f32.mrf.mxu0 }
 0x2ef   : > { %v1913_v14 = vadd.f32 %v1912_v56, %v1799_v52  ;;  %v2865_v52 = vand.u32 4294901760, %v5529_v35  ;;  %v2877_v56 = vand.u32 4294901760, %v5541_v45 }
 0x2f0   : > { %v1914_v61 = vpop.f32.mrf.mxu0 }
 0x2f1   : > { %v2009_v5 = vadd.f32 %v2008_v10, %v1913_v14  ;;  %v2859_v10 = vand.u32 4294901760, %v5535_v43  ;;  %v2728_v61 = vld [vmem:[%s6166_s5] sm:$0xff] }
 0x2f2   : > { %v5557_v14 = vand.u32 4294901760, %v2728_v61 }
 0x310   : > { %v2232_v12 = vpop.f32.mrf.mxu1 }
 0x312   : > { %v2234_v15 = vpop.f32.mrf.mxu1 }
 0x313   : > { %v2854_v15 = vsub.f32 %v5532_v37, %v2853_v53 }
 0x317   : > { %v2140_v47 = vpop.f32.mrf.mxu0 }
 0x318   : > { %v2141_v49 = vadd.f32 %v2140_v47, %v2009_v5  ;;  %v2860_v5 = vsub.f32 %v5535_v43, %v2859_v10  ;;  %v2872_v47 = vsub.f32 %v5538_v44, %v2871_v22 }
 0x319   : > { %v2142_v26 = vpop.f32.mrf.mxu0 }
 0x31a   : > { %v2233_v32 = vadd.f32 %v2232_v12, %v2141_v49  ;;  %v2866_v12 = vsub.f32 %v5529_v35, %v2865_v52  ;;  %v2878_v49 = vsub.f32 %v5541_v45, %v2877_v56  ;;  %v5574_v26 = vsub.f32 %v2728_v61, %v5557_v14 }
 0x31b   : > { %v2873_v2 = vand.u32 4294901760, %v2872_v47  ;;  %v5619_v47 = vsub.f32 %v3275_v51, %v5606_v23 }
 0x31c   : > { %v2236_v62 = vmul.f32 0.25, %v2233_v32  ;;  %v2855_v32 = vand.u32 4294901760, %v2854_v15  ;;  %v2883_v57 = vand.u32 4294901760, %v5574_v26  ;;  %v2879_v25 = vand.u32 4294901760, %v2878_v49 }
 0x31e   : > { %v2238_v28 = vsel %vm2237_vm5, %v2236_v62, -inf  ;;  %v2884_v40 = vsub.f32 %v5574_v26, %v2883_v57 }
 0x31f   : > { %2239 = vmax.xlane.f32.xlu1 %v2238_v28  ;;  %v2867_v28 = vand.u32 4294901760, %v2866_v12 }
 0x3a8   : > { %v2240_v3 = vpop.xlane.xlu1 %2239 }
 0x3a9   : > { %v2241_v1 = vsub.f32 %v2236_v62, %v2240_v3  ;;  %v2861_v62 = vand.u32 4294901760, %v2860_v5 }
 0x3ab   : > { %v2242_v7 = vmul.f32 1.442695, %v2241_v1 }
 0x3ad   : > { %4300 = vpow2.f32 %v2242_v7 }
 0x3ba   : > { %v5475_v50 = vpop.eup %4300 }
 0x3bb   : > { %v2248_v59 = vsel %vm2237_vm5, %v5475_v50, 0 }
 0x3bc   : > { %v2322_v6 = vand.u32 4294901760, %v2248_v59 }
 0x3be   : > { %v2323_v0 = vsub.f32 %v2248_v59, %v2322_v6  ;;  %4217 = vmatmul.mubr.f32.vlgmr.msra.gmra.mxu1 %v2322_v6 }
 0x3bf   : > { %4229 = vmatpush3.msra.mxu1 %v2281_v39  ;;  %4234 = vmatprep.mubr.msk.f32.mxu1 %vm4369_vm0, %v6245_v27 }
 0x3c0   : > { %4230 = vmatprep.subr.mxu1 %v6245_v27  ;;  %v2324_v21 = vand.u32 4294901760, %v2323_v0 }
 0x3c1   : > { %4231 = vmatpush3.msra.mxu1 %v2284_v38 }
 0x3c2   : > { %4232 = vmatprep.subr.mxu1 %v6245_v27  ;;  %v2325_v16 = vsub.f32 %v2323_v0, %v2324_v21 }
 0x3c3   : > { %4233 = vmatpush3.msra.mxu1 %v2287_v58 }
 0x3c4   : > { %4235 = vmatmul.mubr.f32.vlgmr.msra.gmra.mxu1 %v2324_v21  ;;  %4246 = vmatprep.subr.mxu1 %v6245_v27  ;;  %v2326_v30 = vand.u32 4294901760, %v2325_v16  ;;  %v3276_v21 = vld [vmem:[%s6167_s6 + $0x70] sm:$0xff] }
 0x3c5   : > { %4247 = vmatpush3.msra.mxu1 %v2281_v39  ;;  %4252 = vmatprep.mubr.msk.f32.mxu1 %vm4369_vm0, %v6245_v27  ;;  %v5596_v55 = vand.u32 4294901760, %v3276_v21 }
 0x3c6   : > { %4248 = vmatprep.subr.mxu1 %v6245_v27  ;;  %4208 = vmatmul.mubr.f32.vlgmr.msra.gmra.mxu0 %v2326_v30 }
 0x3c7   : > { %4220 = vmatpush3.msra.mxu0 %v2360_v4  ;;  %4249 = vmatpush3.msra.mxu1 %v2284_v38  ;;  %v2885_v38 = vand.u32 4294901760, %v2884_v40  ;;  %v5611_v61 = vsub.f32 %v3276_v21, %v5596_v55 }
 0x3c8   : > { %4221 = vmatprep.subr.mxu0 %v6245_v27  ;;  %4250 = vmatprep.subr.mxu1 %v6245_v27 }
 0x3c9   : > { %4222 = vmatpush3.msra.mxu0 %v5461_v18  ;;  %4251 = vmatpush3.msra.mxu1 %v2287_v58 }
 0x3ca   : > { %4223 = vmatprep.subr.mxu0 %v6245_v27  ;;  %4253 = vmatmul.mubr.f32.vlgmr.msra.gmra.mxu1 %v2322_v6 }
 0x3cb   : > { %4224 = vmatpush3.msra.mxu0 %v5463_v36  ;;  %4225 = vmatprep.mubr.msk.f32.mxu0 %vm4369_vm0, %v6245_v27 }
 0x3cc   : > { %4226 = vmatmul.mubr.f32.vlgmr.msra.gmra.mxu0 %v2323_v0  ;;  %4237 = vmatprep.subr.mxu0 %v6245_v27 }
 0x3cd   : > { %4238 = vmatpush3.msra.mxu0 %v2361_v63  ;;  %4243 = vmatprep.mubr.msk.f32.mxu0 %vm4369_vm0, %v6245_v27 }
 0x3ce   : > { %4239 = vmatprep.subr.mxu0 %v6245_v27  ;;  %2919 = vmatprep.mubr.f32.mxu1 %v6245_v27 }
 0x3cf   : > { %4240 = vmatpush3.msra.mxu0 %v2368_v13  ;;  %2856 = vmatprep.subr.mxu1 %v2855_v32  ;;  %v6225_v32 = vand.u32 4294901760, %v5611_v61 }
 0x3d0   : > { %4241 = vmatprep.subr.mxu0 %v6245_v27  ;;  %2862 = vmatpush1.msra.mxu1 %v2861_v62 }
 0x3d1   : > { %4242 = vmatpush3.msra.mxu0 %v2375_v48  ;;  %2868 = vmatprep.subr.mxu1 %v2867_v28 }
 0x3d2   : > { %4244 = vmatmul.mubr.f32.vlgmr.msra.gmra.mxu0 %v2322_v6  ;;  %2770 = vmatprep.subr.mxu0 %v5520_v29  ;;  %v3277_v6 = vld [vmem:[%s6167_s6 + $0x78] sm:$0xff] }
 0x3d3   : > { %2813 = vmatprep.mubr.f32.mxu0 %v6245_v27  ;;  %2772 = vmatpush1.msra.mxu0 %v5522_v34  ;;  %v5591_v30 = vand.u32 4294901760, %v3277_v6 }
 0x3d4   : > { %2774 = vmatprep.subr.mxu0 %v5512_v60  ;;  %2874 = vmatpush1.msra.mxu1 %v2873_v2 }
 0x3d5   : > { %2776 = vmatpush1.msra.mxu0 %v5524_v17  ;;  %2880 = vmatprep.subr.mxu1 %v2879_v25  ;;  %v5604_v9 = vsub.f32 %v3277_v6, %v5591_v30 }
 0x3d6   : > { %2778 = vmatprep.subr.mxu0 %v5526_v33  ;;  %2886 = vmatpush1.msra.mxu1 %v2885_v38 }
 0x3d7   : > { %2780 = vmatpush1.msra.mxu0 %v5557_v14  ;;  %3039 = vmatprep.subr.mxu1 %v5520_v29  ;;  %v6226_v5 = vand.u32 4294901760, %v5604_v9 }
 0x3d8   : > { %2955 = vmatprep.subr.mxu0 %v5532_v37 }
 0x47e   : > { %v2414_v58 = vpop.f32.mrf.mxu1 }
 0x480   : > { %v4218_v39 = vpop.f32.mrf.mxu1 }
 0x481   : > { %v3269_v39 = vld [vmem:[%s6167_s6 + $0x38] sm:$0xff] }
 0x484   : > { %v2568_v18 = vpop.f32.mrf.mxu1 }
 0x486   : > { %v4236_v36 = vpop.f32.mrf.mxu1  ;;  %v2328_v4 = vpop.f32.mrf.mxu0 }
 0x487   : > { %v2415_v63 = vadd.f32 %v2414_v58, %v2328_v4 }
 0x488   : > { %v4209_v13 = vpop.f32.mrf.mxu0 }
 0x48a   : > { %v2722_v48 = vpop.f32.mrf.mxu1 }
 0x48c   : > { %v2492_v54 = vpop.f32.mrf.mxu0  ;;  %v4254_v42 = vpop.f32.mrf.mxu1 }
 0x48d   : > { %v2493_v41 = vadd.f32 %v2492_v54, %v2415_v63  ;;  %v3268_v63 = vld [vmem:[%s6167_s6 + $0x30] sm:$0xff] }
 0x48e   : > { %v4227_v46 = vpop.f32.mrf.mxu0 }
 0x48f   : > { %v2569_v24 = vadd.f32 %v2568_v18, %v2493_v41  ;;  %v5740_v46 = vand.u32 4294901760, %v3268_v63 }
 0x492   : > { %v2648_v11 = vpop.f32.mrf.mxu0 }
 0x493   : > { %v2649_v3 = vadd.f32 %v2648_v11, %v2569_v24  ;;  %v3267_v11 = vld [vmem:[%s6167_s6 + $0x28] sm:$0xff] }
 0x494   : > { %v4245_v1 = vpop.f32.mrf.mxu0 }
 0x495   : > { %v2723_v7 = vadd.f32 %v2722_v48, %v2649_v3  ;;  %v5730_v48 = vand.u32 4294901760, %v3269_v39 }
 0x497   : > { %4302 = vrcp.f32 %v2723_v7  ;;  %v5744_v24 = vsub.f32 %v3269_v39, %v5730_v48  ;;  %v5754_v7 = vsub.f32 %v3268_v63, %v5740_v46 }
 0x499   : > { %v6217_v6 = vand.u32 4294901760, %v5744_v24 }
 0x4a4   : > { %v4303_v59 = vpop.eup %4302 }
 0x4a5   : > { %v2727_v0 = vmul.f32 %v4303_v59, %v5475_v50  ;;  %v3274_v50 = vld [vmem:[%s6167_s6 + $0x60] sm:$0xff]  ;;  %v5756_v59 = vand.u32 4294901760, %v3267_v11 }
 0x4a6   : > { %v5613_v12 = vand.u32 4294901760, %v3274_v50 }
 0x4a7   : > { %3991 = vrot.lane.b32.xlu0 %v2727_v0, %s4373_s13  ;;  %v2735_v16 = vsel %vm2237_vm5, %v2727_v0, 0  ;;  %v3266_v0 = vld [vmem:[%s6167_s6 + $0x20] sm:$0xff] }
 0x4a8   : > { %v2814_v31 = vand.u32 4294901760, %v2735_v16  ;;  %v5626_v62 = vsub.f32 %v3274_v50, %v5613_v12  ;;  %v5769_v51 = vand.u32 4294901760, %v3266_v0  ;;  %v3265_v50 = vld [vmem:[%s6167_s6 + $0x18] sm:$0xff] }
 0x4aa   : > { %v2815_v8 = vsub.f32 %v2735_v16, %v2814_v31  ;;  %2921 = vmatmul.mubr.f32.vlgmr.msra.gmra.mxu1 %v2814_v31  ;;  %v6216_v16 = vand.u32 4294901760, %v5754_v7 }
 0x4ab   : > { %3041 = vmatpush1.msra.mxu1 %v5522_v34  ;;  %3082 = vmatprep.mubr.f32.mxu1 %v6245_v27 }
 0x4ac   : > { %3043 = vmatprep.subr.mxu1 %v5512_v60  ;;  %v2816_v20 = vand.u32 4294901760, %v2815_v8 }
 0x4ad   : > { %3045 = vmatpush1.msra.mxu1 %v5524_v17 }
 0x4ae   : > { %3047 = vmatprep.subr.mxu1 %v5526_v33  ;;  %v2817_v15 = vsub.f32 %v2815_v8, %v2816_v20 }
 0x4af   : > { %3049 = vmatpush1.msra.mxu1 %v5557_v14 }
 0x4b0   : > { %3086 = vmatmul.mubr.f32.vlgmr.msra.gmra.mxu1 %v2816_v20  ;;  %3209 = vmatprep.subr.mxu1 %v5520_v29  ;;  %v2818_v49 = vand.u32 4294901760, %v2817_v15  ;;  %v3389_v29 = vsub.f32 %v5604_v9, %v6226_v5  ;;  %v3452_v20 = vsub.f32 %v5754_v7, %v6216_v16 }
 0x4b1   : > { %3211 = vmatpush1.msra.mxu1 %v5522_v34  ;;  %3252 = vmatprep.mubr.f32.mxu1 %v6245_v27  ;;  %v6224_v34 = vand.u32 4294901760, %v5619_v47 }
 0x4b2   : > { %3213 = vmatprep.subr.mxu1 %v5512_v60  ;;  %2819 = vmatmul.mubr.f32.vlgmr.msra.gmra.mxu0 %v2818_v49  ;;  %v3396_v60 = vsub.f32 %v5611_v61, %v6225_v32  ;;  %v3390_v28 = vand.u32 4294901760, %v3389_v29  ;;  %v5785_v49 = vsub.f32 %v3266_v0, %v5769_v51  ;;  %v5787_v29 = vand.u32 4294901760, %v3265_v50 }
 0x4b3   : > { %2958 = vmatpush1.msra.mxu0 %v5535_v43  ;;  %3215 = vmatpush1.msra.mxu1 %v5524_v17  ;;  %v6223_v17 = vand.u32 4294901760, %v5626_v62 }
 0x4b4   : > { %2961 = vmatprep.subr.mxu0 %v5529_v35  ;;  %3217 = vmatprep.subr.mxu1 %v5526_v33  ;;  %v3403_v33 = vsub.f32 %v5619_v47, %v6224_v34  ;;  %v3273_v35 = vld [vmem:[%s6167_s6 + $0x58] sm:$0xff] }
 0x4b5   : > { %2964 = vmatpush1.msra.mxu0 %v5538_v44  ;;  %3219 = vmatpush1.msra.mxu1 %v5557_v14  ;;  %v3397_v14 = vand.u32 4294901760, %v3396_v60  ;;  %v3410_v2 = vsub.f32 %v5626_v62, %v6223_v17  ;;  %v5682_v44 = vand.u32 4294901760, %v3273_v35 }
 0x4b6   : > { %2967 = vmatprep.subr.mxu0 %v5541_v45  ;;  %3254 = vmatmul.mubr.f32.vlgmr.msra.gmra.mxu1 %v2814_v31  ;;  %v3404_v37 = vand.u32 4294901760, %v3403_v33  ;;  %v3272_v45 = vld [vmem:[%s6167_s6 + $0x50] sm:$0xff]  ;;  %v3453_v33 = vand.u32 4294901760, %v3452_v20 }
 0x4b7   : > { %2970 = vmatpush1.msra.mxu0 %v5574_v26  ;;  %3003 = vmatprep.mubr.f32.mxu0 %v6245_v27  ;;  %v3411_v43 = vand.u32 4294901760, %v3410_v2  ;;  %v6214_v2 = vand.u32 4294901760, %v5785_v49  ;;  %v3280_v20 = vld [vmem:[%s6167_s6 + $0x90] sm:$0xff] }
 0x4b8   : > { %3006 = vmatmul.mubr.f32.vlgmr.msra.gmra.mxu0 %v2815_v8  ;;  %3121 = vmatprep.subr.mxu0 %v2853_v53  ;;  %v5690_v53 = vand.u32 4294901760, %v3272_v45  ;;  %v3445_v8 = vsub.f32 %v5744_v24, %v6217_v6 }
 0x4b9   : > { %3125 = vmatpush1.msra.mxu0 %v2859_v10  ;;  %3174 = vmatprep.mubr.f32.mxu0 %v6245_v27  ;;  %v3271_v10 = vld [vmem:[%s6167_s6 + $0x48] sm:$0xff] }
 0x4ba   : > { %3129 = vmatprep.subr.mxu0 %v2865_v52  ;;  %3385 = vmatprep.subr.mxu1 %v6245_v27  ;;  %v5688_v52 = vsub.f32 %v3273_v35, %v5682_v44  ;;  %v5701_v26 = vand.u32 4294901760, %v3271_v10  ;;  %v3446_v60 = vand.u32 4294901760, %v3445_v8  ;;  %v3263_v35 = vld [vmem:[%s6167_s6 + $0x8] sm:$0xff] }
 0x4bb   : > { %3133 = vmatpush1.msra.mxu0 %v2871_v22  ;;  %3391 = vmatpush1.msra.mxu1 %v3390_v28  ;;  %v3264_v28 = vld [vmem:[%s6167_s6 + $0x10] sm:$0xff] }
 0x4bc   : > { %3137 = vmatprep.subr.mxu0 %v2877_v56  ;;  %3392 = vmatprep.subr.mxu1 %v6245_v27  ;;  %v6222_v22 = vand.u32 4294901760, %v5688_v52  ;;  %v5699_v56 = vsub.f32 %v3272_v45, %v5690_v53  ;;  %v5713_v38 = vsub.f32 %v3271_v10, %v5701_v26  ;;  %v3466_v10 = vsub.f32 %v5785_v49, %v6214_v2 }
 0x4bd   : > { %3141 = vmatpush1.msra.mxu0 %v2883_v57  ;;  %3398 = vmatpush1.msra.mxu1 %v3397_v14  ;;  %v3270_v57 = vld [vmem:[%s6167_s6 + $0x40] sm:$0xff] }
 0x4be   : > { %3176 = vmatmul.mubr.f32.vlgmr.msra.gmra.mxu0 %v2814_v31  ;;  %3399 = vmatprep.subr.mxu1 %v6245_v27  ;;  %v3417_v25 = vsub.f32 %v5688_v52, %v6222_v22  ;;  %v6221_v40 = vand.u32 4294901760, %v5699_v56  ;;  %v5715_v58 = vand.u32 4294901760, %v3270_v57  ;;  %v6220_v4 = vand.u32 4294901760, %v5713_v38 }
 0x4bf   : > { %3405 = vmatpush1.msra.mxu1 %v3404_v37  ;;  %3285 = vmatprep.subr.mxu0 %v6245_v27  ;;  %v5767_v31 = vsub.f32 %v3267_v11, %v5756_v59  ;;  %v5800_v37 = vsub.f32 %v3265_v50, %v5787_v29 }
 0x4c0   : > { %3406 = vmatprep.subr.mxu1 %v6245_v27  ;;  %3287 = vmatpush1.msra.mxu0 %v5591_v30  ;;  %v3418_v18 = vand.u32 4294901760, %v3417_v25  ;;  %v3424_v36 = vsub.f32 %v5699_v56, %v6221_v40  ;;  %v5727_v13 = vsub.f32 %v3270_v57, %v5715_v58  ;;  %v3431_v42 = vsub.f32 %v5713_v38, %v6220_v4 }
 0x4c1   : > { %3412 = vmatpush1.msra.mxu1 %v3411_v43  ;;  %3288 = vmatprep.subr.mxu0 %v6245_v27  ;;  %v6215_v15 = vand.u32 4294901760, %v5767_v31  ;;  %v5803_v43 = vand.u32 4294901760, %v3264_v28  ;;  %v6213_v57 = vand.u32 4294901760, %v5800_v37  ;;  %v5814_v25 = vand.u32 4294901760, %v3263_v35 }
 0x4c2   : > { %3413 = vmatprep.subr.mxu1 %v6245_v27  ;;  %3290 = vmatpush1.msra.mxu0 %v5596_v55  ;;  %v3425_v54 = vand.u32 4294901760, %v3424_v36  ;;  %v6219_v41 = vand.u32 4294901760, %v5727_v13  ;;  %v3432_v3 = vand.u32 4294901760, %v3431_v42  ;;  %v3467_v36 = vand.u32 4294901760, %v3466_v10 }
 0x4c3   : > { %3291 = vmatprep.subr.mxu0 %v6245_v27  ;;  %3419 = vmatpush1.msra.mxu1 %v3418_v18  ;;  %v3459_v14 = vsub.f32 %v5767_v31, %v6215_v15  ;;  %v5818_v39 = vsub.f32 %v3264_v28, %v5803_v43  ;;  %v3262_v18 = vld [vmem:[%s6167_s6] sm:$0xff]  ;;  %v3473_v63 = vsub.f32 %v5800_v37, %v6213_v57 }
 0x4c4   : > { %3293 = vmatpush1.msra.mxu0 %v5606_v23  ;;  %3420 = vmatprep.subr.mxu1 %v6245_v27  ;;  %v3438_v1 = vsub.f32 %v5727_v13, %v6219_v41  ;;  %v5831_v42 = vand.u32 4294901760, %v3262_v18 }
 0x4c5   : > { %3294 = vmatprep.subr.mxu0 %v6245_v27  ;;  %3426 = vmatpush1.msra.mxu1 %v3425_v54  ;;  %v3460_v45 = vand.u32 4294901760, %v3459_v14  ;;  %v5829_v54 = vsub.f32 %v3263_v35, %v5814_v25  ;;  %v6210_v11 = vand.u32 4294901760, %v5818_v39  ;;  %v5862_v14 = vand.u32 4294901760, %v3280_v20 }
 0x4c6   : > { %3296 = vmatpush1.msra.mxu0 %v5613_v12  ;;  %3427 = vmatprep.subr.mxu1 %v6245_v27  ;;  %v3439_v21 = vand.u32 4294901760, %v3438_v1  ;;  %v3474_v1 = vand.u32 4294901760, %v3473_v63 }
 0x4c7   : > { %3297 = vmatprep.subr.mxu0 %v6245_v27  ;;  %3433 = vmatpush1.msra.mxu1 %v3432_v3  ;;  %v3281_v3 = vld [vmem:[%s6167_s6 + $0x98] sm:$0xff]  ;;  %v6208_v0 = vand.u32 4294901760, %v5829_v54  ;;  %v3480_v50 = vsub.f32 %v5818_v39, %v6210_v11  ;;  %v5875_v63 = vsub.f32 %v3280_v20, %v5862_v14 }
 0x4c8   : > { %3299 = vmatpush1.msra.mxu0 %v5682_v44  ;;  %3434 = vmatprep.subr.mxu1 %v6245_v27  ;;  %v5844_v8 = vand.u32 4294901760, %v3281_v3 }
 0x4c9   : > { %3300 = vmatprep.subr.mxu0 %v6245_v27  ;;  %3440 = vmatpush1.msra.mxu1 %v3439_v21  ;;  %v5842_v21 = vsub.f32 %v3262_v18, %v5831_v42  ;;  %v3481_v35 = vand.u32 4294901760, %v3480_v50  ;;  %v6211_v20 = vand.u32 4294901760, %v5875_v63 }
 0x4ca   : > { %3302 = vmatpush1.msra.mxu0 %v5690_v53  ;;  %3441 = vmatprep.subr.mxu1 %v6245_v27 }
 0x4cb   : > { %3303 = vmatprep.subr.mxu0 %v6245_v27  ;;  %3447 = vmatpush1.msra.mxu1 %v3446_v60  ;;  %v3487_v60 = vsub.f32 %v5829_v54, %v6208_v0  ;;  %v6207_v28 = vand.u32 4294901760, %v5842_v21 }
 0x4cc   : > { %3305 = vmatpush1.msra.mxu0 %v5701_v26  ;;  %3448 = vmatprep.subr.mxu1 %v6245_v27 }
 0x4cd   : > { %3306 = vmatprep.subr.mxu0 %v6245_v27  ;;  %3454 = vmatpush1.msra.mxu1 %v3453_v33  ;;  %v5860_v33 = vsub.f32 %v3281_v3, %v5844_v8  ;;  %v3488_v10 = vand.u32 4294901760, %v3487_v60  ;;  %v3494_v18 = vsub.f32 %v5842_v21, %v6207_v28 }
 0x4ce   : > { %3308 = vmatpush1.msra.mxu0 %v5715_v58  ;;  %3455 = vmatprep.subr.mxu1 %v6245_v27 }
 0x4cf   : > { %3309 = vmatprep.subr.mxu0 %v6245_v27  ;;  %3461 = vmatpush1.msra.mxu1 %v3460_v45  ;;  %v3279_v45 = vld [vmem:[%s6167_s6 + $0x88] sm:$0xff]  ;;  %v3495_v50 = vand.u32 4294901760, %v3494_v18  ;;  %v3532_v18 = vsub.f32 %v5875_v63, %v6211_v20 }
 0x4d0   : > { %3311 = vmatpush1.msra.mxu0 %v5730_v48  ;;  %3462 = vmatprep.subr.mxu1 %v6245_v27  ;;  %v5878_v3 = vand.u32 4294901760, %v3279_v45 }
 0x4d1   : > { %3312 = vmatprep.subr.mxu0 %v6245_v27  ;;  %3468 = vmatpush1.msra.mxu1 %v3467_v36  ;;  %v6209_v36 = vand.u32 4294901760, %v5860_v33 }
 0x4d2   : > { %3314 = vmatpush1.msra.mxu0 %v5740_v46  ;;  %3469 = vmatprep.subr.mxu1 %v6245_v27 }
 0x4d3   : > { %3315 = vmatprep.subr.mxu0 %v6245_v27  ;;  %3475 = vmatpush1.msra.mxu1 %v3474_v1  ;;  %v3278_v1 = vld [vmem:[%s6167_s6 + $0x80] sm:$0xff]  ;;  %v3525_v60 = vsub.f32 %v5860_v33, %v6209_v36 }
 0x4d4   : > { %3317 = vmatpush1.msra.mxu0 %v5756_v59  ;;  %3476 = vmatprep.subr.mxu1 %v6245_v27  ;;  %v5889_v28 = vand.u32 4294901760, %v3278_v1 }
 0x4d5   : > { %3318 = vmatprep.subr.mxu0 %v6245_v27  ;;  %3482 = vmatpush1.msra.mxu1 %v3481_v35  ;;  %v5893_v35 = vsub.f32 %v3279_v45, %v5878_v3  ;;  %v3526_v0 = vand.u32 4294901760, %v3525_v60  ;;  %v3533_v45 = vand.u32 4294901760, %v3532_v18 }
 0x4d6   : > { %3320 = vmatpush1.msra.mxu0 %v5769_v51  ;;  %3483 = vmatprep.subr.mxu1 %v6245_v27  ;;  %v5901_v36 = vsub.f32 %v3278_v1, %v5889_v28 }
 0x4d7   : > { %3321 = vmatprep.subr.mxu0 %v6245_v27  ;;  %3489 = vmatpush1.msra.mxu1 %v3488_v10  ;;  %v6212_v10 = vand.u32 4294901760, %v5893_v35 }
 0x4d8   : > { %3323 = vmatpush1.msra.mxu0 %v5787_v29  ;;  %3490 = vmatprep.subr.mxu1 %v6245_v27  ;;  %v6218_v11 = vand.u32 4294901760, %v5901_v36 }
 0x4d9   : > { %3324 = vmatprep.subr.mxu0 %v6245_v27  ;;  %3496 = vmatpush1.msra.mxu1 %v3495_v50  ;;  %v3539_v1 = vsub.f32 %v5893_v35, %v6212_v10 }
 0x4da   : > { %3326 = vmatpush1.msra.mxu0 %v5803_v43  ;;  %3521 = vmatprep.subr.mxu1 %v6245_v27  ;;  %v3546_v50 = vsub.f32 %v5901_v36, %v6218_v11 }
 0x4db   : > { %3327 = vmatprep.subr.mxu0 %v6245_v27  ;;  %3527 = vmatpush2.msra.mxu1 %v3526_v0  ;;  %v3540_v60 = vand.u32 4294901760, %v3539_v1 }
 0x4dc   : > { %3329 = vmatpush1.msra.mxu0 %v5814_v25  ;;  %3528 = vmatprep.subr.mxu1 %v6245_v27  ;;  %v3547_v18 = vand.u32 4294901760, %v3546_v50 }
 0x4dd   : > { %3330 = vmatprep.subr.mxu0 %v6245_v27  ;;  %3534 = vmatpush2.msra.mxu1 %v3533_v45 }
 0x4de   : > { %3332 = vmatpush1.msra.mxu0 %v5831_v42  ;;  %3535 = vmatprep.subr.mxu1 %v6245_v27 }
 0x4df   : > { %3357 = vmatprep.subr.mxu0 %v6245_v27  ;;  %3541 = vmatpush2.msra.mxu1 %v3540_v60 }
 0x4e0   : > { %3359 = vmatpush2.msra.mxu0 %v5844_v8  ;;  %3542 = vmatprep.subr.mxu1 %v6245_v27 }
 0x4e1   : > { %3360 = vmatprep.subr.mxu0 %v6245_v27  ;;  %3548 = vmatpush2.msra.mxu1 %v3547_v18 }
 0x4e2   : > { %3362 = vmatpush2.msra.mxu0 %v5862_v14  ;;  %3671 = vmatprep.subr.mxu1 %v6245_v27 }
 0x4e3   : > { %3363 = vmatprep.subr.mxu0 %v6245_v27 }
 0x4e4   : > { %3365 = vmatpush2.msra.mxu0 %v5878_v3 }
 0x4e5   : > { %3366 = vmatprep.subr.mxu0 %v6245_v27 }
 0x4e6   : > { %3368 = vmatpush2.msra.mxu0 %v5889_v28 }
 0x4e7   : > { %3557 = vmatprep.subr.mxu0 %v6245_v27 }
 0x56a   : > { %v2922_v0 = vpop.f32.mrf.mxu1 }
 0x56c   : > { %v2924_v10 = vpop.f32.mrf.mxu1 }
 0x570   : > { %v3087_v15 = vpop.f32.mrf.mxu1 }
 0x572   : > { %v2820_v20 = vpop.f32.mrf.mxu0  ;;  %v3089_v41 = vpop.f32.mrf.mxu1 }
 0x573   : > { %v2923_v2 = vadd.f32 %v2922_v0, %v2820_v20 }
 0x574   : > { %v2822_v57 = vpop.f32.mrf.mxu0 }
 0x575   : > { %v2925_v6 = vadd.f32 %v2924_v10, %v2822_v57  ;;  %v4305_v57 = vld [vmem:[%s4509_s8] sm:$0xff]  ;;  %s267_s8 = sand.u32 1, %s4358_s25  }
 0x576   : > { %v3255_v60 = vpop.f32.mrf.mxu1  ;;  %s4075_s29 = sshll.u32 %s267_s8, 3  ;;  %s3999_s18 = scalar_lea.sflag [#allocation3], %s267_s8 }
 0x577   : > { %s269_s13 = scalar_lea.vmem [#allocation2], %s4075_s29 }
 0x578   : > { %v3007_v16 = vpop.f32.mrf.mxu0  ;;  %v3257_v32 = vpop.f32.mrf.mxu1  ;;  %s4012_s14 = sshll.u32 %s269_s13, 4  ;;  %s4013_s14 = int_to_ptr.vmem [resolvable:$true] %s4012_s14 }
 0x579   : > { %v3008_v11 = vadd.f32 %v3007_v16, %v2923_v2  ;;  %s4306_s19 = scalar_lea.vmem %s4013_s14, 128  ;;  %p4313_p0 = scmp.lt.s32.totalorder %s4013_s14, %s4311_s20 }
 0x57a   : > { %v3009_v45 = vpop.f32.mrf.mxu0  ;;  %p4307_p11 = scmp.ne.s32.totalorder %s4013_s14, %s4306_s19  ;;  %p4314_p1 = scmp.lt.s32.totalorder %s4312_s21, %s4306_s19 }
 0x57b   : > { %v3010_v1 = vadd.f32 %v3009_v45, %v2925_v6  ;;  %v3088_v50 = vadd.f32 %v3087_v15, %v3008_v11 }
 0x57c   : > { %p4308_p12 = pnand %p4307_p11, %p4453_p5  ;;  %p4315_p2 = por %p4314_p1, %p4313_p0 }
 0x57d   : > { %v3090_v18 = vadd.f32 %v3089_v41, %v3010_v1  ;;  %v6284_v41 = vand.u32 4294901760, %v5893_v35 }
 0x57e   : > { %v3177_v4 = vpop.f32.mrf.mxu0  ;;  %p4309_p13 = pneg %p4308_p12 }
 0x57f   : > { %v3178_v40 = vadd.f32 %v3177_v4, %v3088_v50 }
 0x580   : > { %v3179_v22 = vpop.f32.mrf.mxu0  ;;  %p4316_p3 = pnand %p4315_p2, %p4309_p13 }
 0x581   : > { %v3256_v17 = vadd.f32 %v3255_v60, %v3178_v40  ;;  %v3180_v34 = vadd.f32 %v3179_v22, %v3090_v18  ;;  %v6277_v22 = vand.u32 4294901760, %v5785_v49 }
 0x583   : > { %v3260_v5 = vmul.f32 %v3256_v17, %v5241_v19  ;;  %v3258_v20 = vadd.f32 %v3257_v32, %v3180_v34 }
 0x585   : > { %v5920_v0 = vand.u32 4294901760, %v3260_v5  ;;  %v3261_v16 = vmul.f32 %v4305_v57, %v3258_v20 }
 0x587   : > { %v5924_v2 = vsub.f32 %v3260_v5, %v5920_v0  ;;  %v3283_v6 = vsel %vm279_vm1, %v3261_v16, 0 }
 0x588   : > { %v5927_v15 = vand.u32 4294901760, %v3283_v6 }
 0x589   : > { %v3377_v4 = vand.u32 4294901760, %v5924_v2 }
 0x58a   : > { %v3370_v40 = vsub.f32 %v3283_v6, %v5927_v15  ;;  %3550 = vmatprep.mubr.f32.mxu1 %v5927_v15 }
 0x58b   : > { %3552 = vmatmul.mubr.f32.vlgmr.msra.gmra.mxu1 %v5920_v0  ;;  %v3378_v5 = vsub.f32 %v5924_v2, %v3377_v4 }
 0x58c   : > { %3673 = vmatpush1.msra.mxu1 %v5591_v30  ;;  %v3371_v19 = vand.u32 4294901760, %v3370_v40 }
 0x58d   : > { %3674 = vmatprep.subr.mxu1 %v6245_v27  ;;  %v3379_v17 = vand.u32 4294901760, %v3378_v5 }
 0x58e   : > { %3676 = vmatpush1.msra.mxu1 %v5596_v55  ;;  %3758 = vmatprep.mubr.f32.mxu1 %v3371_v19  ;;  %v3372_v32 = vsub.f32 %v3370_v40, %v3371_v19 }
 0x58f   : > { %3677 = vmatprep.subr.mxu1 %v6245_v27 }
 0x590   : > { %3679 = vmatpush1.msra.mxu1 %v5606_v23  ;;  %v3373_v34 = vand.u32 4294901760, %v3372_v32 }
 0x591   : > { %3680 = vmatprep.subr.mxu1 %v6245_v27 }
 0x592   : > { %3682 = vmatpush1.msra.mxu1 %v5613_v12  ;;  %3374 = vmatprep.mubr.f32.mxu0 %v3373_v34 }
 0x593   : > { %3683 = vmatprep.subr.mxu1 %v6245_v27  ;;  %3380 = vmatmul.mubr.f32.vlgmr.msra.gmra.mxu0 %v3379_v17 }
 0x594   : > { %3560 = vmatpush1.msra.mxu0 %v5604_v9  ;;  %3685 = vmatpush1.msra.mxu1 %v5682_v44 }
 0x595   : > { %3561 = vmatprep.subr.mxu0 %v6245_v27  ;;  %3663 = vmatprep.mubr.f32.mxu0 %v3370_v40 }
 0x596   : > { %3686 = vmatprep.subr.mxu1 %v6245_v27  ;;  %3564 = vmatpush1.msra.mxu0 %v5611_v61 }
 0x597   : > { %3688 = vmatpush1.msra.mxu1 %v5690_v53  ;;  %3565 = vmatprep.subr.mxu0 %v6245_v27 }
 0x598   : > { %3689 = vmatprep.subr.mxu1 %v6245_v27  ;;  %3568 = vmatpush1.msra.mxu0 %v5619_v47 }
 0x599   : > { %3691 = vmatpush1.msra.mxu1 %v5701_v26  ;;  %3569 = vmatprep.subr.mxu0 %v6245_v27 }
 0x59a   : > { %3692 = vmatprep.subr.mxu1 %v6245_v27  ;;  %3572 = vmatpush1.msra.mxu0 %v5626_v62 }
 0x59b   : > { %3694 = vmatpush1.msra.mxu1 %v5715_v58  ;;  %3573 = vmatprep.subr.mxu0 %v6245_v27 }
 0x59c   : > { %3695 = vmatprep.subr.mxu1 %v6245_v27  ;;  %3576 = vmatpush1.msra.mxu0 %v5688_v52 }
 0x59d   : > { %3697 = vmatpush1.msra.mxu1 %v5730_v48  ;;  %3577 = vmatprep.subr.mxu0 %v6245_v27 }
 0x59e   : > { %3698 = vmatprep.subr.mxu1 %v6245_v27  ;;  %3580 = vmatpush1.msra.mxu0 %v5699_v56 }
 0x59f   : > { %3700 = vmatpush1.msra.mxu1 %v5740_v46  ;;  %3581 = vmatprep.subr.mxu0 %v6245_v27 }
 0x5a0   : > { %3701 = vmatprep.subr.mxu1 %v6245_v27  ;;  %3584 = vmatpush1.msra.mxu0 %v5713_v38 }
 0x5a1   : > { %3703 = vmatpush1.msra.mxu1 %v5756_v59  ;;  %3585 = vmatprep.subr.mxu0 %v6245_v27 }
 0x5a2   : > { %3704 = vmatprep.subr.mxu1 %v6245_v27  ;;  %3588 = vmatpush1.msra.mxu0 %v5727_v13 }
 0x5a3   : > { %3706 = vmatpush1.msra.mxu1 %v5769_v51  ;;  %3589 = vmatprep.subr.mxu0 %v6245_v27 }
 0x5a4   : > { %3707 = vmatprep.subr.mxu1 %v6245_v27  ;;  %3592 = vmatpush1.msra.mxu0 %v5744_v24 }
 0x5a5   : > { %3709 = vmatpush1.msra.mxu1 %v5787_v29  ;;  %3593 = vmatprep.subr.mxu0 %v6245_v27 }
 0x5a6   : > { %3710 = vmatprep.subr.mxu1 %v6245_v27  ;;  %3596 = vmatpush1.msra.mxu0 %v5754_v7 }
 0x5a7   : > { %3712 = vmatpush1.msra.mxu1 %v5803_v43  ;;  %3597 = vmatprep.subr.mxu0 %v6245_v27 }
 0x5a8   : > { %3713 = vmatprep.subr.mxu1 %v6245_v27  ;;  %3600 = vmatpush1.msra.mxu0 %v5767_v31 }
 0x5a9   : > { %3715 = vmatpush1.msra.mxu1 %v5814_v25  ;;  %3601 = vmatprep.subr.mxu0 %v6245_v27 }
 0x5aa   : > { %3716 = vmatprep.subr.mxu1 %v6245_v27  ;;  %3604 = vmatpush1.msra.mxu0 %v5785_v49 }
 0x5ab   : > { %3718 = vmatpush1.msra.mxu1 %v5831_v42  ;;  %3605 = vmatprep.subr.mxu0 %v6245_v27 }
 0x5ac   : > { %3743 = vmatprep.subr.mxu1 %v6245_v27  ;;  %3608 = vmatpush1.msra.mxu0 %v5800_v37 }
 0x5ad   : > { %3745 = vmatpush2.msra.mxu1 %v5844_v8  ;;  %3609 = vmatprep.subr.mxu0 %v6245_v27 }
 0x5ae   : > { %3746 = vmatprep.subr.mxu1 %v6245_v27  ;;  %3612 = vmatpush1.msra.mxu0 %v5818_v39 }
 0x5af   : > { %3748 = vmatpush2.msra.mxu1 %v5862_v14  ;;  %3613 = vmatprep.subr.mxu0 %v6245_v27 }
 0x5b0   : > { %3749 = vmatprep.subr.mxu1 %v6245_v27  ;;  %3616 = vmatpush1.msra.mxu0 %v5829_v54 }
 0x5b1   : > { %3751 = vmatpush2.msra.mxu1 %v5878_v3  ;;  %3617 = vmatprep.subr.mxu0 %v6245_v27 }
 0x5b2   : > { %3752 = vmatprep.subr.mxu1 %v6245_v27  ;;  %3620 = vmatpush1.msra.mxu0 %v5842_v21 }
 0x5b3   : > { %3754 = vmatpush2.msra.mxu1 %v5889_v28  ;;  %3645 = vmatprep.subr.mxu0 %v6245_v27 }
 0x5b4   : > { %3762 = vmatmul.mubr.f32.vlgmr.msra.gmra.mxu1 %v3377_v4  ;;  %3899 = vmatprep.subr.mxu1 %v6245_v27 }
 0x5b5   : > { %3648 = vmatpush2.msra.mxu0 %v5860_v33  ;;  %3901 = vmatpush1.msra.mxu1 %v5591_v30  ;;  %v6266_v30 = vand.u32 4294901760, %v5604_v9  ;;  %v6268_v9 = vand.u32 4294901760, %v5619_v47  ;;  %v6272_v47 = vand.u32 4294901760, %v5713_v38  ;;  %v6280_v38 = vand.u32 4294901760, %v5829_v54 }
 0x5b6   : > { %3984 = vmatprep.mubr.f32.mxu1 %v5927_v15  ;;  %3649 = vmatprep.subr.mxu0 %v6245_v27 }
 0x5b7   : > { %3902 = vmatprep.subr.mxu1 %v6245_v27  ;;  %3652 = vmatpush2.msra.mxu0 %v5875_v63 }
 0x5b8   : > { %3904 = vmatpush1.msra.mxu1 %v5596_v55  ;;  %3653 = vmatprep.subr.mxu0 %v6245_v27  ;;  %v6267_v55 = vand.u32 4294901760, %v5611_v61  ;;  %v6270_v61 = vand.u32 4294901760, %v5688_v52  ;;  %v6275_v52 = vand.u32 4294901760, %v5754_v7 }
 0x5b9   : > { %3905 = vmatprep.subr.mxu1 %v6245_v27  ;;  %3656 = vmatpush2.msra.mxu0 %v5893_v35 }
 0x5ba   : > { %3907 = vmatpush1.msra.mxu1 %v5606_v23  ;;  %3657 = vmatprep.subr.mxu0 %v6245_v27  ;;  %v6269_v23 = vand.u32 4294901760, %v5626_v62  ;;  %v6273_v62 = vand.u32 4294901760, %v5727_v13  ;;  %v6282_v13 = vand.u32 4294901760, %v5860_v33 }
 0x5bb   : > { %3908 = vmatprep.subr.mxu1 %v6245_v27  ;;  %3660 = vmatpush2.msra.mxu0 %v5901_v36 }
 0x5bc   : > { %3910 = vmatpush1.msra.mxu1 %v5613_v12  ;;  %3666 = vmatmul.mubr.f32.vlgmr.msra.gmra.mxu0 %v5924_v2  ;;  %v6271_v12 = vand.u32 4294901760, %v5699_v56  ;;  %v6278_v56 = vand.u32 4294901760, %v5800_v37 }
 0x5bd   : > { %3767 = vmatprep.subr.mxu0 %v6245_v27  ;;  %3911 = vmatprep.subr.mxu1 %v6245_v27 }
 0x5be   : > { %3771 = vmatpush1.msra.mxu0 %v6266_v30  ;;  %3892 = vmatprep.mubr.f32.mxu0 %v5927_v15 }
 0x5bf   : > { %3913 = vmatpush1.msra.mxu1 %v5682_v44  ;;  %3772 = vmatprep.subr.mxu0 %v6245_v27  ;;  %v6274_v44 = vand.u32 4294901760, %v5744_v24 }
 0x5c0   : > { %3914 = vmatprep.subr.mxu1 %v6245_v27  ;;  %3776 = vmatpush1.msra.mxu0 %v6267_v55 }
 0x5c1   : > { %3916 = vmatpush1.msra.mxu1 %v5690_v53  ;;  %3777 = vmatprep.subr.mxu0 %v6245_v27  ;;  %v6276_v53 = vand.u32 4294901760, %v5767_v31 }
 0x5c2   : > { %3917 = vmatprep.subr.mxu1 %v6245_v27  ;;  %3781 = vmatpush1.msra.mxu0 %v6268_v9 }
 0x5c3   : > { %3919 = vmatpush1.msra.mxu1 %v5701_v26  ;;  %3782 = vmatprep.subr.mxu0 %v6245_v27  ;;  %v6279_v26 = vand.u32 4294901760, %v5818_v39 }
 0x5c4   : > { %3920 = vmatprep.subr.mxu1 %v6245_v27  ;;  %3786 = vmatpush1.msra.mxu0 %v6269_v23 }
 0x5c5   : > { %3922 = vmatpush1.msra.mxu1 %v5715_v58  ;;  %3787 = vmatprep.subr.mxu0 %v6245_v27  ;;  %v6281_v58 = vand.u32 4294901760, %v5842_v21 }
 0x5c6   : > { %3923 = vmatprep.subr.mxu1 %v6245_v27  ;;  %3791 = vmatpush1.msra.mxu0 %v6270_v61 }
 0x5c7   : > { %3925 = vmatpush1.msra.mxu1 %v5730_v48  ;;  %3792 = vmatprep.subr.mxu0 %v6245_v27  ;;  %v6283_v48 = vand.u32 4294901760, %v5875_v63 }
 0x5c8   : > { %3926 = vmatprep.subr.mxu1 %v6245_v27  ;;  %3796 = vmatpush1.msra.mxu0 %v6271_v12 }
 0x5c9   : > { %3928 = vmatpush1.msra.mxu1 %v5740_v46  ;;  %3797 = vmatprep.subr.mxu0 %v6245_v27  ;;  %v6285_v46 = vand.u32 4294901760, %v5901_v36 }
 0x5ca   : > { %3929 = vmatprep.subr.mxu1 %v6245_v27  ;;  %3801 = vmatpush1.msra.mxu0 %v6272_v47 }
 0x5cb   : > { %3931 = vmatpush1.msra.mxu1 %v5756_v59  ;;  %3802 = vmatprep.subr.mxu0 %v6245_v27 }
 0x5cc   : > { %3932 = vmatprep.subr.mxu1 %v6245_v27  ;;  %3806 = vmatpush1.msra.mxu0 %v6273_v62 }
 0x5cd   : > { %3934 = vmatpush1.msra.mxu1 %v5769_v51  ;;  %3807 = vmatprep.subr.mxu0 %v6245_v27 }
 0x5ce   : > { %3935 = vmatprep.subr.mxu1 %v6245_v27  ;;  %3811 = vmatpush1.msra.mxu0 %v6274_v44 }
 0x5cf   : > { %3937 = vmatpush1.msra.mxu1 %v5787_v29  ;;  %3812 = vmatprep.subr.mxu0 %v6245_v27 }
 0x5d0   : > { %3938 = vmatprep.subr.mxu1 %v6245_v27  ;;  %3816 = vmatpush1.msra.mxu0 %v6275_v52 }
 0x5d1   : > { %3940 = vmatpush1.msra.mxu1 %v5803_v43  ;;  %3817 = vmatprep.subr.mxu0 %v6245_v27 }
 0x5d2   : > { %3941 = vmatprep.subr.mxu1 %v6245_v27  ;;  %3821 = vmatpush1.msra.mxu0 %v6276_v53 }
 0x5d3   : > { %3943 = vmatpush1.msra.mxu1 %v5814_v25  ;;  %3822 = vmatprep.subr.mxu0 %v6245_v27 }
 0x5d4   : > { %3944 = vmatprep.subr.mxu1 %v6245_v27  ;;  %3826 = vmatpush1.msra.mxu0 %v6277_v22 }
 0x5d5   : > { %3946 = vmatpush1.msra.mxu1 %v5831_v42  ;;  %3827 = vmatprep.subr.mxu0 %v6245_v27 }
 0x5d6   : > { %3971 = vmatprep.subr.mxu1 %v6245_v27  ;;  %3831 = vmatpush1.msra.mxu0 %v6278_v56 }
 0x5d7   : > { %3973 = vmatpush2.msra.mxu1 %v5844_v8  ;;  %3832 = vmatprep.subr.mxu0 %v6245_v27 }
 0x5d8   : > { %3974 = vmatprep.subr.mxu1 %v6245_v27  ;;  %3836 = vmatpush1.msra.mxu0 %v6279_v26 }
 0x5d9   : > { %3976 = vmatpush2.msra.mxu1 %v5862_v14  ;;  %3837 = vmatprep.subr.mxu0 %v6245_v27 }
 0x5da   : > { %3977 = vmatprep.subr.mxu1 %v6245_v27  ;;  %3841 = vmatpush1.msra.mxu0 %v6280_v38 }
 0x5db   : > { %3979 = vmatpush2.msra.mxu1 %v5878_v3  ;;  %3842 = vmatprep.subr.mxu0 %v6245_v27 }
 0x5dc   : > { %3980 = vmatprep.subr.mxu1 %v6245_v27  ;;  %3846 = vmatpush1.msra.mxu0 %v6281_v58 }
 0x5dd   : > { %3982 = vmatpush2.msra.mxu1 %v5889_v28  ;;  %3871 = vmatprep.subr.mxu0 %v6245_v27  ;;  %v3992_v28 = vpop.permute.xlu0 %3991 }
 0x5de   : > { %3986 = vmatmul.mubr.f32.vlgmr.msra.gmra.mxu1 %v5920_v0  ;;  %3875 = vmatpush2.msra.mxu0 %v6282_v13 }
 0x5df   : > { %3876 = vmatprep.subr.mxu0 %v6245_v27 }
 0x5e0   : > { %3880 = vmatpush2.msra.mxu0 %v6283_v48 }
 0x5e1   : > { %3881 = vmatprep.subr.mxu0 %v6245_v27 }
 0x5e2   : > { %3885 = vmatpush2.msra.mxu0 %v6284_v41 }
 0x5e3   : > { %3886 = vmatprep.subr.mxu0 %v6245_v27 }
 0x5e4   : > { %3890 = vmatpush2.msra.mxu0 %v6285_v46 }
 0x5e5   : > { %3894 = vmatmul.mubr.f32.vlgmr.msra.gmra.mxu0 %v5920_v0 }
 0x64b   : > { %v3553_v24 = vpop.f32.mrf.mxu1 }
 0x64d   : > { %v3555_v7 = vpop.f32.mrf.mxu1 }
 0x653   : > { %v3381_v59 = vpop.f32.mrf.mxu0 }
 0x654   : > { %v3554_v31 = vadd.f32 %v3553_v24, %v3381_v59 }
 0x655   : > { %v3383_v51 = vpop.f32.mrf.mxu0 }
 0x674   : > { %v3763_v49 = vpop.f32.mrf.mxu1 }
 0x676   : > { %v3765_v29 = vpop.f32.mrf.mxu1 }
 0x67c   : > { %v3667_v37 = vpop.f32.mrf.mxu0 }
 0x67d   : > { %v3668_v39 = vadd.f32 %v3667_v37, %v3554_v31 }
 0x67e   : > { %v3669_v43 = vpop.f32.mrf.mxu0 }
 0x67f   : > { %v3764_v27 = vadd.f32 %v3763_v49, %v3668_v39 }
 0x69e   : > { %v3987_v25 = vpop.f32.mrf.mxu1 }
 0x6a0   : > { %v3989_v54 = vpop.f32.mrf.mxu1 }
 0x6a5   : > { %v3895_v42 = vpop.f32.mrf.mxu0 }
 0x6a6   : > { %v3896_v11 = vadd.f32 %v3895_v42, %v3764_v27 }
 0x6a7   : > { %v3897_v21 = vpop.f32.mrf.mxu0 }
 0x6a8   : > { %v3988_v8 = vadd.f32 %v3987_v25, %v3896_v11 }
 0x6aa   : > { %v3995_v33 = vsel %vm3994_vm7, %v3988_v8, %v3992_v28 }
 0x6ab   : > { %3997 = vst.msk [vmem:[%s269_s13] sm:$0xff] %vm3996_vm8, %v3995_v33 }
 0x6ac   : > { %4319 = shalt.err (!%p4316_p3)
}
 0x6ad   : > { %s4320_s22 = scalar_lea.hbm %s6126_s17, 128  ;;  %s4324_s29 = scalar_lea.hbm %s6168_s7, 256 }
 0x6ae   : > { %p4321_p4 = scmp.ne.s32.totalorder %s6126_s17, %s4320_s22  ;;  %p4325_p9 = scmp.lt.s32.totalorder %s6126_s17, %s6168_s7 }
 0x6af   : > { %p4326_p10 = scmp.lt.s32.totalorder %s4324_s29, %s4320_s22 }
 0x6b0   : > { %p4322_p7 = pnand %p4321_p4, %p4453_p5 }
 0x6b1   : > { %p4327_p11 = por %p4326_p10, %p4325_p9 }
 0x6b2   : > { %p4323_p8 = pneg %p4322_p7 }
 0x6b4   : > { %p4328_p12 = pnand %p4327_p11, %p4323_p8 }
 0x6b6   : > { %4331 = shalt.err (!%p4328_p12)
}
 0x6b7   : > { %4255 = dma.vmem_to_hbm [thread:$0]  (%p4453_p5), %s4013_s14, 128, %s6126_s17, %s3999_s18  }
 0x6b8 PF: > { %p4261_p13 = scmp.ge.s32.totalorder %s4366_s27, 2  ;;  %s4024_s15 = sand.u32 1, %s4354_s24  }
 0x6b9   : > { %s4025_s16 = scalar_lea.sflag [#allocation3], %s4024_s15 }
 0x6ba   : > { %p4258_p0 = pnand %p4261_p13, %p4457_p6 }
 0x6bc   : > { %p4259_p1 = pneg %p4258_p0 }
 0x6be   : > { %4349 = dma.done.wait (%p4259_p1), %s4025_s16, 128  }
 0x6bf   : > { %4351 = vsyncadd (%p4259_p1), %s4025_s16, 4294967168  ;;  %p17_p2 = scmp.ge.s32.totalorder %s4440_s30, 4   ;;  %s6286_s24 = smov %s4358_s25 }
 0x6c0   : > { %s6287_s25 = smov %s4362_s26  ;;  %s6288_s26 = smov %s4451_s10 }
 0x6c1   : > { %s6289_s27 = smov %s4440_s30  ;;  %19 = sbr.rel (!%p17_p2) target bundleno = 3 (0x3), region = 83 }
 0x6c6   :  { %4030 = vsyncpa [#allocation3], 1 }
 0x6c7   :  { %4032 = vsyncpa [#allocation3 + $0x1], 1 }

</bundles_post_ra>
